<compile_context>
chip_gen: v7x
topology: tpu7x:2x2x1
jax: 0.10.0
libtpu: 0.0.40
codegen_flags: <defaults>
</compile_context>

<pallas_src>
import jax
import jax.numpy as jnp
from jax import lax
from jax.experimental import pallas as pl
from jax.experimental.pallas import tpu as pltpu

# Small hyper-parameters consistent with the PyTorch module's constructor.
VOCAB_SIZE = 50
OUTPUT_SIZE = 1
EMBEDDING_DIM = 32
HIDDEN_DIM = 32
N_LAYERS = 2
BATCH = 2
SEQ_LEN = 8
BATCH_PAD = 8  # one full sublane group


def sentiment_lstm_kernel(embeds_ref, h0_ref, c0_ref,
                          wih0_ref, whh0_ref, b0_ref,
                          wih1_ref, whh1_ref, b1_ref,
                          fcw_ref, fcb_ref,
                          sig_ref, hn_ref, cn_ref):
    # embeds_ref: (T, BP, E) time-major, batch padded to BP=8
    # wih*_ref: (in, 4H)   whh*_ref: (H, 4H)   b*_ref: (1, 4H) (= b_ih + b_hh)
    # fcw_ref: (H, OUTPUT_SIZE)   fcb_ref: (1, OUTPUT_SIZE)
    # Outputs: sig_ref (BP, 1), hn_ref/cn_ref (N_LAYERS, BP, H)
    H = HIDDEN_DIM
    T = embeds_ref.shape[0]
    BP = embeds_ref.shape[1]
    G = 4 * H  # 128 gate lanes == one vreg lane width

    # ---- loop-invariant operands hoisted once (weights ~16 vregs -> live in registers) ----
    wih0 = wih0_ref[...]
    whh0 = whh0_ref[...]
    wih1 = wih1_ref[...]
    whh1 = whh1_ref[...]
    b0 = jnp.broadcast_to(b0_ref[...], (BP, G))   # hoist bias broadcast (not CSE'd otherwise)
    b1 = jnp.broadcast_to(b1_ref[...], (BP, G))

    def lstm_cell(x, h, c, wih, whh, b):
        # gates: (BP, 4H) = (8, 128), PyTorch gate order [i, f, g, o]
        gates = (jnp.dot(x, wih, preferred_element_type=jnp.float32)
                 + jnp.dot(h, whh, preferred_element_type=jnp.float32)
                 + b)
        s = jax.nn.sigmoid(gates)   # one full-width EUP pass (covers i, f, o)
        th = jnp.tanh(gates)        # one full-width EUP pass (covers g)
        # Bring f / g / o to lanes [0:H) via XLU lane rotations (pltpu.roll == np.roll
        # semantics), so all elementwise combines use offset-0 slices only.
        f_al = pltpu.roll(s, 3 * H, 1)    # lanes [H:2H)  -> [0:H)
        g_al = pltpu.roll(th, 2 * H, 1)   # lanes [2H:3H) -> [0:H)
        o_al = pltpu.roll(s, H, 1)        # lanes [3H:4H) -> [0:H)
        c_new = f_al[:, :H] * c + s[:, :H] * g_al[:, :H]
        h_new = o_al[:, :H] * jnp.tanh(c_new)
        return h_new, c_new

    # ---- recurrent state lives in vregs for the whole kernel ----
    h0 = h0_ref[0]
    c0 = c0_ref[0]
    h1 = h0_ref[1]
    c1 = c0_ref[1]

    # T is a compile-time constant: fully static unroll (single basic block; the independent
    # x_t @ W_ih_l0 projections can be scheduled off the serial h/c dependency chain).
    for t in range(T):
        x_t = embeds_ref[t]                               # (BP, E), static load
        h0, c0 = lstm_cell(x_t, h0, c0, wih0, whh0, b0)
        # TODO(synk): inter-layer LSTM dropout (p=0.5) and nn.Dropout(0.3) are training-time
        # only; eval-mode semantics -> identity (not applied).
        h1, c1 = lstm_cell(h0, h1, c1, wih1, whh1, b1)

    # ---- write final states exactly once ----
    hn_ref[0] = h0
    hn_ref[1] = h1
    cn_ref[0] = c0
    cn_ref[1] = c1

    # PyTorch: sigmoid(fc(lstm_out)).view(B, -1)[:, -1]
    # == sigmoid(fc(h_T of top layer))[:, -1]  (last output unit, last timestep)
    logits = jnp.dot(h1, fcw_ref[...],
                     preferred_element_type=jnp.float32) + fcb_ref[...]
    sig_ref[...] = jax.nn.sigmoid(logits)[:, -1:]          # (BP, 1)


def init_params(key):
    ks = jax.random.split(key, 11)

    def u(k, shape, bound):
        return jax.random.uniform(k, shape, jnp.float32, -bound, bound)

    bound = 1.0 / (HIDDEN_DIM ** 0.5)
    return {
        'embedding': jax.random.normal(ks[0], (VOCAB_SIZE, EMBEDDING_DIM),
                                       jnp.float32),
        'w_ih_l0': u(ks[1], (4 * HIDDEN_DIM, EMBEDDING_DIM), bound),
        'w_hh_l0': u(ks[2], (4 * HIDDEN_DIM, HIDDEN_DIM), bound),
        'b_ih_l0': u(ks[3], (4 * HIDDEN_DIM,), bound),
        'b_hh_l0': u(ks[4], (4 * HIDDEN_DIM,), bound),
        'w_ih_l1': u(ks[5], (4 * HIDDEN_DIM, HIDDEN_DIM), bound),
        'w_hh_l1': u(ks[6], (4 * HIDDEN_DIM, HIDDEN_DIM), bound),
        'b_ih_l1': u(ks[7], (4 * HIDDEN_DIM,), bound),
        'b_hh_l1': u(ks[8], (4 * HIDDEN_DIM,), bound),
        'fc_w': u(ks[9], (OUTPUT_SIZE, HIDDEN_DIM), bound),
        'fc_b': u(ks[10], (OUTPUT_SIZE,), bound),
    }


@jax.jit
def sentiment_rnn_forward(tokens, hidden, params):
    """tokens: (B, T) int32; hidden: (h0, c0) each (N_LAYERS, B, H)."""
    h0, c0 = hidden
    B, T = tokens.shape
    BP = BATCH_PAD

    # Pad batch to a full sublane group; fold the embedding gather with the time-major
    # layout by gathering on tokens.T (result is already (T, BP, E) -> no XLA transpose).
    tokens_p = jnp.zeros((BP, T), tokens.dtype).at[:B].set(tokens)
    embeds_tm = params['embedding'][tokens_p.T]                     # (T, BP, E)

    h0_p = jnp.zeros((N_LAYERS, BP, HIDDEN_DIM), jnp.float32).at[:, :B].set(h0)
    c0_p = jnp.zeros((N_LAYERS, BP, HIDDEN_DIM), jnp.float32).at[:, :B].set(c0)

    wih0_t = params['w_ih_l0'].T                    # (E, 4H)
    whh0_t = params['w_hh_l0'].T                    # (H, 4H)
    b0 = (params['b_ih_l0'] + params['b_hh_l0']).reshape(1, -1)
    wih1_t = params['w_ih_l1'].T                    # (H, 4H)
    whh1_t = params['w_hh_l1'].T                    # (H, 4H)
    b1 = (params['b_ih_l1'] + params['b_hh_l1']).reshape(1, -1)
    fcw_t = params['fc_w'].T                        # (H, OUTPUT_SIZE)
    fcb = params['fc_b'].reshape(1, -1)

    vmem = pl.BlockSpec(memory_space=pltpu.MemorySpace.VMEM)
    sig, hn, cn = pl.pallas_call(
        sentiment_lstm_kernel,
        out_shape=(
            jax.ShapeDtypeStruct((BP, 1), jnp.float32),
            jax.ShapeDtypeStruct((N_LAYERS, BP, HIDDEN_DIM), jnp.float32),
            jax.ShapeDtypeStruct((N_LAYERS, BP, HIDDEN_DIM), jnp.float32),
        ),
        in_specs=[vmem] * 11,
        out_specs=(vmem, vmem, vmem),
    )(embeds_tm, h0_p, c0_p, wih0_t, whh0_t, b0, wih1_t, whh1_t, b1, fcw_t, fcb)

    # Slice the batch padding back off.
    return sig[:B, 0], (hn[:, :B], cn[:, :B])


def ref_forward(tokens, hidden, params):
    """Pure-JAX reference mirroring the PyTorch forward (eval mode)."""
    h0, c0 = hidden
    embeds = params['embedding'][tokens]            # (B, T, E)

    def run_layer(xs, h, c, wih, whh, bih, bhh):
        Hd = h.shape[-1]

        def step(carry, x):
            h, c = carry
            gates = x @ wih.T + h @ whh.T + bih + bhh
            i = jax.nn.sigmoid(gates[:, :Hd])
            f = jax.nn.sigmoid(gates[:, Hd:2 * Hd])
            g = jnp.tanh(gates[:, 2 * Hd:3 * Hd])
            o = jax.nn.sigmoid(gates[:, 3 * Hd:])
            c = f * c + i * g
            h = o * jnp.tanh(c)
            return (h, c), h

        (h, c), ys = lax.scan(step, (h, c), jnp.transpose(xs, (1, 0, 2)))
        return jnp.transpose(ys, (1, 0, 2)), h, c

    y0, h0n, c0n = run_layer(embeds, h0[0], c0[0], params['w_ih_l0'],
                             params['w_hh_l0'], params['b_ih_l0'],
                             params['b_hh_l0'])
    y1, h1n, c1n = run_layer(y0, h0[1], c0[1], params['w_ih_l1'],
                             params['w_hh_l1'], params['b_ih_l1'],
                             params['b_hh_l1'])
    out = y1.reshape(-1, HIDDEN_DIM) @ params['fc_w'].T + params['fc_b']
    sig = jax.nn.sigmoid(out).reshape(tokens.shape[0], -1)[:, -1]
    return sig, (jnp.stack([h0n, h1n]), jnp.stack([c0n, c1n]))


if __name__ == "__main__":
    key = jax.random.PRNGKey(0)
    pkey, xkey = jax.random.split(key)
    params = init_params(pkey)

    tokens = jax.random.randint(xkey, (BATCH, SEQ_LEN), 0, VOCAB_SIZE,
                                dtype=jnp.int32)
    h0 = jnp.zeros((N_LAYERS, BATCH, HIDDEN_DIM), jnp.float32)
    c0 = jnp.zeros((N_LAYERS, BATCH, HIDDEN_DIM), jnp.float32)

    sig, (hn, cn) = sentiment_rnn_forward(tokens, (h0, c0), params)
    jax.block_until_ready((sig, hn, cn))

    ref_sig, (ref_hn, ref_cn) = ref_forward(tokens, (h0, c0), params)
    assert sig.shape == (BATCH,)
    assert hn.shape == (N_LAYERS, BATCH, HIDDEN_DIM)
    assert jnp.allclose(sig, ref_sig, atol=1e-5), (sig, ref_sig)
    assert jnp.allclose(hn, ref_hn, atol=1e-5)
    assert jnp.allclose(cn, ref_cn, atol=1e-5)

    print("KERNEL_OK")
</pallas_src>

<mosaic_0001>
module attributes {stable_mosaic.version = 11 : i64} {
  func.func @sentiment_lstm_kernel(%arg0: memref<8x8x32xf32, #tpu.memory_space<vmem>>, %arg1: memref<2x8x32xf32, #tpu.memory_space<vmem>>, %arg2: memref<2x8x32xf32, #tpu.memory_space<vmem>>, %arg3: memref<32x128xf32, #tpu.memory_space<vmem>>, %arg4: memref<32x128xf32, #tpu.memory_space<vmem>>, %arg5: memref<1x128xf32, #tpu.memory_space<vmem>>, %arg6: memref<32x128xf32, #tpu.memory_space<vmem>>, %arg7: memref<32x128xf32, #tpu.memory_space<vmem>>, %arg8: memref<1x128xf32, #tpu.memory_space<vmem>>, %arg9: memref<32x1xf32, #tpu.memory_space<vmem>>, %arg10: memref<1x1xf32, #tpu.memory_space<vmem>>, %arg11: memref<8x1xf32, #tpu.memory_space<vmem>>, %arg12: memref<2x8x32xf32, #tpu.memory_space<vmem>>, %arg13: memref<2x8x32xf32, #tpu.memory_space<vmem>>) attributes {dimension_semantics = [], scalar_prefetch = 0 : i64, scratch_operands = 0 : i64, tpu.core_type = #tpu.core_type<tc>} {
    %c0 = arith.constant 0 : index
    %c0_0 = arith.constant 0 : index
    %0 = vector.load %arg3[%c0, %c0_0] : memref<32x128xf32, #tpu.memory_space<vmem>>, vector<32x128xf32>
    %c0_1 = arith.constant 0 : index
    %c0_2 = arith.constant 0 : index
    %1 = vector.load %arg4[%c0_1, %c0_2] : memref<32x128xf32, #tpu.memory_space<vmem>>, vector<32x128xf32>
    %c0_3 = arith.constant 0 : index
    %c0_4 = arith.constant 0 : index
    %2 = vector.load %arg6[%c0_3, %c0_4] : memref<32x128xf32, #tpu.memory_space<vmem>>, vector<32x128xf32>
    %c0_5 = arith.constant 0 : index
    %c0_6 = arith.constant 0 : index
    %3 = vector.load %arg7[%c0_5, %c0_6] : memref<32x128xf32, #tpu.memory_space<vmem>>, vector<32x128xf32>
    %c0_7 = arith.constant 0 : index
    %c0_8 = arith.constant 0 : index
    %4 = vector.load %arg5[%c0_7, %c0_8] : memref<1x128xf32, #tpu.memory_space<vmem>>, vector<1x128xf32>
    %5 = vector.shape_cast %4 : vector<1x128xf32> to vector<1x128xf32>
    %6 = vector.broadcast %5 : vector<1x128xf32> to vector<8x128xf32>
    %c0_9 = arith.constant 0 : index
    %c0_10 = arith.constant 0 : index
    %7 = vector.load %arg8[%c0_9, %c0_10] : memref<1x128xf32, #tpu.memory_space<vmem>>, vector<1x128xf32>
    %8 = vector.shape_cast %7 : vector<1x128xf32> to vector<1x128xf32>
    %9 = vector.broadcast %8 : vector<1x128xf32> to vector<8x128xf32>
    %c0_11 = arith.constant 0 : index
    %c0_12 = arith.constant 0 : index
    %c0_13 = arith.constant 0 : index
    %10 = vector.load %arg1[%c0_11, %c0_12, %c0_13] : memref<2x8x32xf32, #tpu.memory_space<vmem>>, vector<1x8x32xf32>
    %11 = vector.shape_cast %10 : vector<1x8x32xf32> to vector<8x32xf32>
    %c0_14 = arith.constant 0 : index
    %c0_15 = arith.constant 0 : index
    %c0_16 = arith.constant 0 : index
    %12 = vector.load %arg2[%c0_14, %c0_15, %c0_16] : memref<2x8x32xf32, #tpu.memory_space<vmem>>, vector<1x8x32xf32>
    %13 = vector.shape_cast %12 : vector<1x8x32xf32> to vector<8x32xf32>
    %c1 = arith.constant 1 : index
    %c0_17 = arith.constant 0 : index
    %c0_18 = arith.constant 0 : index
    %14 = vector.load %arg1[%c1, %c0_17, %c0_18] : memref<2x8x32xf32, #tpu.memory_space<vmem>>, vector<1x8x32xf32>
    %15 = vector.shape_cast %14 : vector<1x8x32xf32> to vector<8x32xf32>
    %c1_19 = arith.constant 1 : index
    %c0_20 = arith.constant 0 : index
    %c0_21 = arith.constant 0 : index
    %16 = vector.load %arg2[%c1_19, %c0_20, %c0_21] : memref<2x8x32xf32, #tpu.memory_space<vmem>>, vector<1x8x32xf32>
    %17 = vector.shape_cast %16 : vector<1x8x32xf32> to vector<8x32xf32>
    %c0_22 = arith.constant 0 : index
    %c0_23 = arith.constant 0 : index
    %c0_24 = arith.constant 0 : index
    %18 = vector.load %arg0[%c0_22, %c0_23, %c0_24] : memref<8x8x32xf32, #tpu.memory_space<vmem>>, vector<1x8x32xf32>
    %19 = vector.shape_cast %18 : vector<1x8x32xf32> to vector<8x32xf32>
    %cst = arith.constant dense<0.000000e+00> : vector<8x128xf32>
    %20 = tpu.matmul %19, %0, %cst {dimension_numbers = #tpu.dot_dimension_numbers<[1], [0], [0], [1], [0, 0, 1, 1], [], []>} : vector<8x32xf32>, vector<32x128xf32>, vector<8x128xf32> -> vector<8x128xf32>
    %cst_25 = arith.constant dense<0.000000e+00> : vector<8x128xf32>
    %21 = tpu.matmul %11, %1, %cst_25 {dimension_numbers = #tpu.dot_dimension_numbers<[1], [0], [0], [1], [0, 0, 1, 1], [], []>} : vector<8x32xf32>, vector<32x128xf32>, vector<8x128xf32> -> vector<8x128xf32>
    %22 = arith.addf %20, %21 : vector<8x128xf32>
    %23 = arith.addf %22, %6 : vector<8x128xf32>
    %24 = arith.negf %23 : vector<8x128xf32>
    %25 = math.exp %24 : vector<8x128xf32>
    %cst_26 = arith.constant 1.000000e+00 : f32
    %26 = vector.broadcast %cst_26 : f32 to vector<8x128xf32>
    %27 = arith.addf %26, %25 : vector<8x128xf32>
    %28 = arith.divf %26, %27 : vector<8x128xf32>
    %29 = math.tanh %23 : vector<8x128xf32>
    %c96_i32 = arith.constant 96 : i32
    %30 = tpu.dynamic_rotate %28 by %c96_i32 dim 1 : vector<8x128xf32>, i32 -> vector<8x128xf32>
    %c64_i32 = arith.constant 64 : i32
    %31 = tpu.dynamic_rotate %29 by %c64_i32 dim 1 : vector<8x128xf32>, i32 -> vector<8x128xf32>
    %c32_i32 = arith.constant 32 : i32
    %32 = tpu.dynamic_rotate %28 by %c32_i32 dim 1 : vector<8x128xf32>, i32 -> vector<8x128xf32>
    %33 = vector.extract_strided_slice %30 {offsets = [0, 0], sizes = [8, 32], strides = [1, 1]} : vector<8x128xf32> to vector<8x32xf32>
    %34 = arith.mulf %33, %13 : vector<8x32xf32>
    %35 = vector.extract_strided_slice %28 {offsets = [0, 0], sizes = [8, 32], strides = [1, 1]} : vector<8x128xf32> to vector<8x32xf32>
    %36 = vector.extract_strided_slice %31 {offsets = [0, 0], sizes = [8, 32], strides = [1, 1]} : vector<8x128xf32> to vector<8x32xf32>
    %37 = arith.mulf %35, %36 : vector<8x32xf32>
    %38 = arith.addf %34, %37 : vector<8x32xf32>
    %39 = vector.extract_strided_slice %32 {offsets = [0, 0], sizes = [8, 32], strides = [1, 1]} : vector<8x128xf32> to vector<8x32xf32>
    %40 = math.tanh %38 : vector<8x32xf32>
    %41 = arith.mulf %39, %40 : vector<8x32xf32>
    %cst_27 = arith.constant dense<0.000000e+00> : vector<8x128xf32>
    %42 = tpu.matmul %41, %2, %cst_27 {dimension_numbers = #tpu.dot_dimension_numbers<[1], [0], [0], [1], [0, 0, 1, 1], [], []>} : vector<8x32xf32>, vector<32x128xf32>, vector<8x128xf32> -> vector<8x128xf32>
    %cst_28 = arith.constant dense<0.000000e+00> : vector<8x128xf32>
    %43 = tpu.matmul %15, %3, %cst_28 {dimension_numbers = #tpu.dot_dimension_numbers<[1], [0], [0], [1], [0, 0, 1, 1], [], []>} : vector<8x32xf32>, vector<32x128xf32>, vector<8x128xf32> -> vector<8x128xf32>
    %44 = arith.addf %42, %43 : vector<8x128xf32>
    %45 = arith.addf %44, %9 : vector<8x128xf32>
    %46 = arith.negf %45 : vector<8x128xf32>
    %47 = math.exp %46 : vector<8x128xf32>
    %cst_29 = arith.constant 1.000000e+00 : f32
    %48 = vector.broadcast %cst_29 : f32 to vector<8x128xf32>
    %49 = arith.addf %48, %47 : vector<8x128xf32>
    %50 = arith.divf %48, %49 : vector<8x128xf32>
    %51 = math.tanh %45 : vector<8x128xf32>
    %c96_i32_30 = arith.constant 96 : i32
    %52 = tpu.dynamic_rotate %50 by %c96_i32_30 dim 1 : vector<8x128xf32>, i32 -> vector<8x128xf32>
    %c64_i32_31 = arith.constant 64 : i32
    %53 = tpu.dynamic_rotate %51 by %c64_i32_31 dim 1 : vector<8x128xf32>, i32 -> vector<8x128xf32>
    %c32_i32_32 = arith.constant 32 : i32
    %54 = tpu.dynamic_rotate %50 by %c32_i32_32 dim 1 : vector<8x128xf32>, i32 -> vector<8x128xf32>
    %55 = vector.extract_strided_slice %52 {offsets = [0, 0], sizes = [8, 32], strides = [1, 1]} : vector<8x128xf32> to vector<8x32xf32>
    %56 = arith.mulf %55, %17 : vector<8x32xf32>
    %57 = vector.extract_strided_slice %50 {offsets = [0, 0], sizes = [8, 32], strides = [1, 1]} : vector<8x128xf32> to vector<8x32xf32>
    %58 = vector.extract_strided_slice %53 {offsets = [0, 0], sizes = [8, 32], strides = [1, 1]} : vector<8x128xf32> to vector<8x32xf32>
    %59 = arith.mulf %57, %58 : vector<8x32xf32>
    %60 = arith.addf %56, %59 : vector<8x32xf32>
    %61 = vector.extract_strided_slice %54 {offsets = [0, 0], sizes = [8, 32], strides = [1, 1]} : vector<8x128xf32> to vector<8x32xf32>
    %62 = math.tanh %60 : vector<8x32xf32>
    %63 = arith.mulf %61, %62 : vector<8x32xf32>
    %c1_33 = arith.constant 1 : index
    %c0_34 = arith.constant 0 : index
    %c0_35 = arith.constant 0 : index
    %64 = vector.load %arg0[%c1_33, %c0_34, %c0_35] : memref<8x8x32xf32, #tpu.memory_space<vmem>>, vector<1x8x32xf32>
    %65 = vector.shape_cast %64 : vector<1x8x32xf32> to vector<8x32xf32>
    %cst_36 = arith.constant dense<0.000000e+00> : vector<8x128xf32>
    %66 = tpu.matmul %65, %0, %cst_36 {dimension_numbers = #tpu.dot_dimension_numbers<[1], [0], [0], [1], [0, 0, 1, 1], [], []>} : vector<8x32xf32>, vector<32x128xf32>, vector<8x128xf32> -> vector<8x128xf32>
    %cst_37 = arith.constant dense<0.000000e+00> : vector<8x128xf32>
    %67 = tpu.matmul %41, %1, %cst_37 {dimension_numbers = #tpu.dot_dimension_numbers<[1], [0], [0], [1], [0, 0, 1, 1], [], []>} : vector<8x32xf32>, vector<32x128xf32>, vector<8x128xf32> -> vector<8x128xf32>
    %68 = arith.addf %66, %67 : vector<8x128xf32>
    %69 = arith.addf %68, %6 : vector<8x128xf32>
    %70 = arith.negf %69 : vector<8x128xf32>
    %71 = math.exp %70 : vector<8x128xf32>
    %cst_38 = arith.constant 1.000000e+00 : f32
    %72 = vector.broadcast %cst_38 : f32 to vector<8x128xf32>
    %73 = arith.addf %72, %71 : vector<8x128xf32>
    %74 = arith.divf %72, %73 : vector<8x128xf32>
    %75 = math.tanh %69 : vector<8x128xf32>
    %c96_i32_39 = arith.constant 96 : i32
    %76 = tpu.dynamic_rotate %74 by %c96_i32_39 dim 1 : vector<8x128xf32>, i32 -> vector<8x128xf32>
    %c64_i32_40 = arith.constant 64 : i32
    %77 = tpu.dynamic_rotate %75 by %c64_i32_40 dim 1 : vector<8x128xf32>, i32 -> vector<8x128xf32>
    %c32_i32_41 = arith.constant 32 : i32
    %78 = tpu.dynamic_rotate %74 by %c32_i32_41 dim 1 : vector<8x128xf32>, i32 -> vector<8x128xf32>
    %79 = vector.extract_strided_slice %76 {offsets = [0, 0], sizes = [8, 32], strides = [1, 1]} : vector<8x128xf32> to vector<8x32xf32>
    %80 = arith.mulf %79, %38 : vector<8x32xf32>
    %81 = vector.extract_strided_slice %74 {offsets = [0, 0], sizes = [8, 32], strides = [1, 1]} : vector<8x128xf32> to vector<8x32xf32>
    %82 = vector.extract_strided_slice %77 {offsets = [0, 0], sizes = [8, 32], strides = [1, 1]} : vector<8x128xf32> to vector<8x32xf32>
    %83 = arith.mulf %81, %82 : vector<8x32xf32>
    %84 = arith.addf %80, %83 : vector<8x32xf32>
    %85 = vector.extract_strided_slice %78 {offsets = [0, 0], sizes = [8, 32], strides = [1, 1]} : vector<8x128xf32> to vector<8x32xf32>
    %86 = math.tanh %84 : vector<8x32xf32>
    %87 = arith.mulf %85, %86 : vector<8x32xf32>
    %cst_42 = arith.constant dense<0.000000e+00> : vector<8x128xf32>
    %88 = tpu.matmul %87, %2, %cst_42 {dimension_numbers = #tpu.dot_dimension_numbers<[1], [0], [0], [1], [0, 0, 1, 1], [], []>} : vector<8x32xf32>, vector<32x128xf32>, vector<8x128xf32> -> vector<8x128xf32>
    %cst_43 = arith.constant dense<0.000000e+00> : vector<8x128xf32>
    %89 = tpu.matmul %63, %3, %cst_43 {dimension_numbers = #tpu.dot_dimension_numbers<[1], [0], [0], [1], [0, 0, 1, 1], [], []>} : vector<8x32xf32>, vector<32x128xf32>, vector<8x128xf32> -> vector<8x128xf32>
    %90 = arith.addf %88, %89 : vector<8x128xf32>
    %91 = arith.addf %90, %9 : vector<8x128xf32>
    %92 = arith.negf %91 : vector<8x128xf32>
    %93 = math.exp %92 : vector<8x128xf32>
    %cst_44 = arith.constant 1.000000e+00 : f32
    %94 = vector.broadcast %cst_44 : f32 to vector<8x128xf32>
    %95 = arith.addf %94, %93 : vector<8x128xf32>
    %96 = arith.divf %94, %95 : vector<8x128xf32>
    %97 = math.tanh %91 : vector<8x128xf32>
    %c96_i32_45 = arith.constant 96 : i32
    %98 = tpu.dynamic_rotate %96 by %c96_i32_45 dim 1 : vector<8x128xf32>, i32 -> vector<8x128xf32>
    %c64_i32_46 = arith.constant 64 : i32
    %99 = tpu.dynamic_rotate %97 by %c64_i32_46 dim 1 : vector<8x128xf32>, i32 -> vector<8x128xf32>
    %c32_i32_47 = arith.constant 32 : i32
    %100 = tpu.dynamic_rotate %96 by %c32_i32_47 dim 1 : vector<8x128xf32>, i32 -> vector<8x128xf32>
    %101 = vector.extract_strided_slice %98 {offsets = [0, 0], sizes = [8, 32], strides = [1, 1]} : vector<8x128xf32> to vector<8x32xf32>
    %102 = arith.mulf %101, %60 : vector<8x32xf32>
    %103 = vector.extract_strided_slice %96 {offsets = [0, 0], sizes = [8, 32], strides = [1, 1]} : vector<8x128xf32> to vector<8x32xf32>
    %104 = vector.extract_strided_slice %99 {offsets = [0, 0], sizes = [8, 32], strides = [1, 1]} : vector<8x128xf32> to vector<8x32xf32>
    %105 = arith.mulf %103, %104 : vector<8x32xf32>
    %106 = arith.addf %102, %105 : vector<8x32xf32>
    %107 = vector.extract_strided_slice %100 {offsets = [0, 0], sizes = [8, 32], strides = [1, 1]} : vector<8x128xf32> to vector<8x32xf32>
    %108 = math.tanh %106 : vector<8x32xf32>
    %109 = arith.mulf %107, %108 : vector<8x32xf32>
    %c2 = arith.constant 2 : index
    %c0_48 = arith.constant 0 : index
    %c0_49 = arith.constant 0 : index
    %110 = vector.load %arg0[%c2, %c0_48, %c0_49] : memref<8x8x32xf32, #tpu.memory_space<vmem>>, vector<1x8x32xf32>
    %111 = vector.shape_cast %110 : vector<1x8x32xf32> to vector<8x32xf32>
    %cst_50 = arith.constant dense<0.000000e+00> : vector<8x128xf32>
    %112 = tpu.matmul %111, %0, %cst_50 {dimension_numbers = #tpu.dot_dimension_numbers<[1], [0], [0], [1], [0, 0, 1, 1], [], []>} : vector<8x32xf32>, vector<32x128xf32>, vector<8x128xf32> -> vector<8x128xf32>
    %cst_51 = arith.constant dense<0.000000e+00> : vector<8x128xf32>
    %113 = tpu.matmul %87, %1, %cst_51 {dimension_numbers = #tpu.dot_dimension_numbers<[1], [0], [0], [1], [0, 0, 1, 1], [], []>} : vector<8x32xf32>, vector<32x128xf32>, vector<8x128xf32> -> vector<8x128xf32>
    %114 = arith.addf %112, %113 : vector<8x128xf32>
    %115 = arith.addf %114, %6 : vector<8x128xf32>
    %116 = arith.negf %115 : vector<8x128xf32>
    %117 = math.exp %116 : vector<8x128xf32>
    %cst_52 = arith.constant 1.000000e+00 : f32
    %118 = vector.broadcast %cst_52 : f32 to vector<8x128xf32>
    %119 = arith.addf %118, %117 : vector<8x128xf32>
    %120 = arith.divf %118, %119 : vector<8x128xf32>
    %121 = math.tanh %115 : vector<8x128xf32>
    %c96_i32_53 = arith.constant 96 : i32
    %122 = tpu.dynamic_rotate %120 by %c96_i32_53 dim 1 : vector<8x128xf32>, i32 -> vector<8x128xf32>
    %c64_i32_54 = arith.constant 64 : i32
    %123 = tpu.dynamic_rotate %121 by %c64_i32_54 dim 1 : vector<8x128xf32>, i32 -> vector<8x128xf32>
    %c32_i32_55 = arith.constant 32 : i32
    %124 = tpu.dynamic_rotate %120 by %c32_i32_55 dim 1 : vector<8x128xf32>, i32 -> vector<8x128xf32>
    %125 = vector.extract_strided_slice %122 {offsets = [0, 0], sizes = [8, 32], strides = [1, 1]} : vector<8x128xf32> to vector<8x32xf32>
    %126 = arith.mulf %125, %84 : vector<8x32xf32>
    %127 = vector.extract_strided_slice %120 {offsets = [0, 0], sizes = [8, 32], strides = [1, 1]} : vector<8x128xf32> to vector<8x32xf32>
    %128 = vector.extract_strided_slice %123 {offsets = [0, 0], sizes = [8, 32], strides = [1, 1]} : vector<8x128xf32> to vector<8x32xf32>
    %129 = arith.mulf %127, %128 : vector<8x32xf32>
    %130 = arith.addf %126, %129 : vector<8x32xf32>
    %131 = vector.extract_strided_slice %124 {offsets = [0, 0], sizes = [8, 32], strides = [1, 1]} : vector<8x128xf32> to vector<8x32xf32>
    %132 = math.tanh %130 : vector<8x32xf32>
    %133 = arith.mulf %131, %132 : vector<8x32xf32>
    %cst_56 = arith.constant dense<0.000000e+00> : vector<8x128xf32>
    %134 = tpu.matmul %133, %2, %cst_56 {dimension_numbers = #tpu.dot_dimension_numbers<[1], [0], [0], [1], [0, 0, 1, 1], [], []>} : vector<8x32xf32>, vector<32x128xf32>, vector<8x128xf32> -> vector<8x128xf32>
    %cst_57 = arith.constant dense<0.000000e+00> : vector<8x128xf32>
    %135 = tpu.matmul %109, %3, %cst_57 {dimension_numbers = #tpu.dot_dimension_numbers<[1], [0], [0], [1], [0, 0, 1, 1], [], []>} : vector<8x32xf32>, vector<32x128xf32>, vector<8x128xf32> -> vector<8x128xf32>
    %136 = arith.addf %134, %135 : vector<8x128xf32>
    %137 = arith.addf %136, %9 : vector<8x128xf32>
    %138 = arith.negf %137 : vector<8x128xf32>
    %139 = math.exp %138 : vector<8x128xf32>
    %cst_58 = arith.constant 1.000000e+00 : f32
    %140 = vector.broadcast %cst_58 : f32 to vector<8x128xf32>
    %141 = arith.addf %140, %139 : vector<8x128xf32>
    %142 = arith.divf %140, %141 : vector<8x128xf32>
    %143 = math.tanh %137 : vector<8x128xf32>
    %c96_i32_59 = arith.constant 96 : i32
    %144 = tpu.dynamic_rotate %142 by %c96_i32_59 dim 1 : vector<8x128xf32>, i32 -> vector<8x128xf32>
    %c64_i32_60 = arith.constant 64 : i32
    %145 = tpu.dynamic_rotate %143 by %c64_i32_60 dim 1 : vector<8x128xf32>, i32 -> vector<8x128xf32>
    %c32_i32_61 = arith.constant 32 : i32
    %146 = tpu.dynamic_rotate %142 by %c32_i32_61 dim 1 : vector<8x128xf32>, i32 -> vector<8x128xf32>
    %147 = vector.extract_strided_slice %144 {offsets = [0, 0], sizes = [8, 32], strides = [1, 1]} : vector<8x128xf32> to vector<8x32xf32>
    %148 = arith.mulf %147, %106 : vector<8x32xf32>
    %149 = vector.extract_strided_slice %142 {offsets = [0, 0], sizes = [8, 32], strides = [1, 1]} : vector<8x128xf32> to vector<8x32xf32>
    %150 = vector.extract_strided_slice %145 {offsets = [0, 0], sizes = [8, 32], strides = [1, 1]} : vector<8x128xf32> to vector<8x32xf32>
    %151 = arith.mulf %149, %150 : vector<8x32xf32>
    %152 = arith.addf %148, %151 : vector<8x32xf32>
    %153 = vector.extract_strided_slice %146 {offsets = [0, 0], sizes = [8, 32], strides = [1, 1]} : vector<8x128xf32> to vector<8x32xf32>
    %154 = math.tanh %152 : vector<8x32xf32>
    %155 = arith.mulf %153, %154 : vector<8x32xf32>
    %c3 = arith.constant 3 : index
    %c0_62 = arith.constant 0 : index
    %c0_63 = arith.constant 0 : index
    %156 = vector.load %arg0[%c3, %c0_62, %c0_63] : memref<8x8x32xf32, #tpu.memory_space<vmem>>, vector<1x8x32xf32>
    %157 = vector.shape_cast %156 : vector<1x8x32xf32> to vector<8x32xf32>
    %cst_64 = arith.constant dense<0.000000e+00> : vector<8x128xf32>
    %158 = tpu.matmul %157, %0, %cst_64 {dimension_numbers = #tpu.dot_dimension_numbers<[1], [0], [0], [1], [0, 0, 1, 1], [], []>} : vector<8x32xf32>, vector<32x128xf32>, vector<8x128xf32> -> vector<8x128xf32>
    %cst_65 = arith.constant dense<0.000000e+00> : vector<8x128xf32>
    %159 = tpu.matmul %133, %1, %cst_65 {dimension_numbers = #tpu.dot_dimension_numbers<[1], [0], [0], [1], [0, 0, 1, 1], [], []>} : vector<8x32xf32>, vector<32x128xf32>, vector<8x128xf32> -> vector<8x128xf32>
    %160 = arith.addf %158, %159 : vector<8x128xf32>
    %161 = arith.addf %160, %6 : vector<8x128xf32>
    %162 = arith.negf %161 : vector<8x128xf32>
    %163 = math.exp %162 : vector<8x128xf32>
    %cst_66 = arith.constant 1.000000e+00 : f32
    %164 = vector.broadcast %cst_66 : f32 to vector<8x128xf32>
    %165 = arith.addf %164, %163 : vector<8x128xf32>
    %166 = arith.divf %164, %165 : vector<8x128xf32>
    %167 = math.tanh %161 : vector<8x128xf32>
    %c96_i32_67 = arith.constant 96 : i32
    %168 = tpu.dynamic_rotate %166 by %c96_i32_67 dim 1 : vector<8x128xf32>, i32 -> vector<8x128xf32>
    %c64_i32_68 = arith.constant 64 : i32
    %169 = tpu.dynamic_rotate %167 by %c64_i32_68 dim 1 : vector<8x128xf32>, i32 -> vector<8x128xf32>
    %c32_i32_69 = arith.constant 32 : i32
    %170 = tpu.dynamic_rotate %166 by %c32_i32_69 dim 1 : vector<8x128xf32>, i32 -> vector<8x128xf32>
    %171 = vector.extract_strided_slice %168 {offsets = [0, 0], sizes = [8, 32], strides = [1, 1]} : vector<8x128xf32> to vector<8x32xf32>
    %172 = arith.mulf %171, %130 : vector<8x32xf32>
    %173 = vector.extract_strided_slice %166 {offsets = [0, 0], sizes = [8, 32], strides = [1, 1]} : vector<8x128xf32> to vector<8x32xf32>
    %174 = vector.extract_strided_slice %169 {offsets = [0, 0], sizes = [8, 32], strides = [1, 1]} : vector<8x128xf32> to vector<8x32xf32>
    %175 = arith.mulf %173, %174 : vector<8x32xf32>
    %176 = arith.addf %172, %175 : vector<8x32xf32>
    %177 = vector.extract_strided_slice %170 {offsets = [0, 0], sizes = [8, 32], strides = [1, 1]} : vector<8x128xf32> to vector<8x32xf32>
    %178 = math.tanh %176 : vector<8x32xf32>
    %179 = arith.mulf %177, %178 : vector<8x32xf32>
    %cst_70 = arith.constant dense<0.000000e+00> : vector<8x128xf32>
    %180 = tpu.matmul %179, %2, %cst_70 {dimension_numbers = #tpu.dot_dimension_numbers<[1], [0], [0], [1], [0, 0, 1, 1], [], []>} : vector<8x32xf32>, vector<32x128xf32>, vector<8x128xf32> -> vector<8x128xf32>
    %cst_71 = arith.constant dense<0.000000e+00> : vector<8x128xf32>
    %181 = tpu.matmul %155, %3, %cst_71 {dimension_numbers = #tpu.dot_dimension_numbers<[1], [0], [0], [1], [0, 0, 1, 1], [], []>} : vector<8x32xf32>, vector<32x128xf32>, vector<8x128xf32> -> vector<8x128xf32>
    %182 = arith.addf %180, %181 : vector<8x128xf32>
    %183 = arith.addf %182, %9 : vector<8x128xf32>
    %184 = arith.negf %183 : vector<8x128xf32>
    %185 = math.exp %184 : vector<8x128xf32>
    %cst_72 = arith.constant 1.000000e+00 : f32
    %186 = vector.broadcast %cst_72 : f32 to vector<8x128xf32>
    %187 = arith.addf %186, %185 : vector<8x128xf32>
    %188 = arith.divf %186, %187 : vector<8x128xf32>
    %189 = math.tanh %183 : vector<8x128xf32>
    %c96_i32_73 = arith.constant 96 : i32
    %190 = tpu.dynamic_rotate %188 by %c96_i32_73 dim 1 : vector<8x128xf32>, i32 -> vector<8x128xf32>
    %c64_i32_74 = arith.constant 64 : i32
    %191 = tpu.dynamic_rotate %189 by %c64_i32_74 dim 1 : vector<8x128xf32>, i32 -> vector<8x128xf32>
    %c32_i32_75 = arith.constant 32 : i32
    %192 = tpu.dynamic_rotate %188 by %c32_i32_75 dim 1 : vector<8x128xf32>, i32 -> vector<8x128xf32>
    %193 = vector.extract_strided_slice %190 {offsets = [0, 0], sizes = [8, 32], strides = [1, 1]} : vector<8x128xf32> to vector<8x32xf32>
    %194 = arith.mulf %193, %152 : vector<8x32xf32>
    %195 = vector.extract_strided_slice %188 {offsets = [0, 0], sizes = [8, 32], strides = [1, 1]} : vector<8x128xf32> to vector<8x32xf32>
    %196 = vector.extract_strided_slice %191 {offsets = [0, 0], sizes = [8, 32], strides = [1, 1]} : vector<8x128xf32> to vector<8x32xf32>
    %197 = arith.mulf %195, %196 : vector<8x32xf32>
    %198 = arith.addf %194, %197 : vector<8x32xf32>
    %199 = vector.extract_strided_slice %192 {offsets = [0, 0], sizes = [8, 32], strides = [1, 1]} : vector<8x128xf32> to vector<8x32xf32>
    %200 = math.tanh %198 : vector<8x32xf32>
    %201 = arith.mulf %199, %200 : vector<8x32xf32>
    %c4 = arith.constant 4 : index
    %c0_76 = arith.constant 0 : index
    %c0_77 = arith.constant 0 : index
    %202 = vector.load %arg0[%c4, %c0_76, %c0_77] : memref<8x8x32xf32, #tpu.memory_space<vmem>>, vector<1x8x32xf32>
    %203 = vector.shape_cast %202 : vector<1x8x32xf32> to vector<8x32xf32>
    %cst_78 = arith.constant dense<0.000000e+00> : vector<8x128xf32>
    %204 = tpu.matmul %203, %0, %cst_78 {dimension_numbers = #tpu.dot_dimension_numbers<[1], [0], [0], [1], [0, 0, 1, 1], [], []>} : vector<8x32xf32>, vector<32x128xf32>, vector<8x128xf32> -> vector<8x128xf32>
    %cst_79 = arith.constant dense<0.000000e+00> : vector<8x128xf32>
    %205 = tpu.matmul %179, %1, %cst_79 {dimension_numbers = #tpu.dot_dimension_numbers<[1], [0], [0], [1], [0, 0, 1, 1], [], []>} : vector<8x32xf32>, vector<32x128xf32>, vector<8x128xf32> -> vector<8x128xf32>
    %206 = arith.addf %204, %205 : vector<8x128xf32>
    %207 = arith.addf %206, %6 : vector<8x128xf32>
    %208 = arith.negf %207 : vector<8x128xf32>
    %209 = math.exp %208 : vector<8x128xf32>
    %cst_80 = arith.constant 1.000000e+00 : f32
    %210 = vector.broadcast %cst_80 : f32 to vector<8x128xf32>
    %211 = arith.addf %210, %209 : vector<8x128xf32>
    %212 = arith.divf %210, %211 : vector<8x128xf32>
    %213 = math.tanh %207 : vector<8x128xf32>
    %c96_i32_81 = arith.constant 96 : i32
    %214 = tpu.dynamic_rotate %212 by %c96_i32_81 dim 1 : vector<8x128xf32>, i32 -> vector<8x128xf32>
    %c64_i32_82 = arith.constant 64 : i32
    %215 = tpu.dynamic_rotate %213 by %c64_i32_82 dim 1 : vector<8x128xf32>, i32 -> vector<8x128xf32>
    %c32_i32_83 = arith.constant 32 : i32
    %216 = tpu.dynamic_rotate %212 by %c32_i32_83 dim 1 : vector<8x128xf32>, i32 -> vector<8x128xf32>
    %217 = vector.extract_strided_slice %214 {offsets = [0, 0], sizes = [8, 32], strides = [1, 1]} : vector<8x128xf32> to vector<8x32xf32>
    %218 = arith.mulf %217, %176 : vector<8x32xf32>
    %219 = vector.extract_strided_slice %212 {offsets = [0, 0], sizes = [8, 32], strides = [1, 1]} : vector<8x128xf32> to vector<8x32xf32>
    %220 = vector.extract_strided_slice %215 {offsets = [0, 0], sizes = [8, 32], strides = [1, 1]} : vector<8x128xf32> to vector<8x32xf32>
    %221 = arith.mulf %219, %220 : vector<8x32xf32>
    %222 = arith.addf %218, %221 : vector<8x32xf32>
    %223 = vector.extract_strided_slice %216 {offsets = [0, 0], sizes = [8, 32], strides = [1, 1]} : vector<8x128xf32> to vector<8x32xf32>
    %224 = math.tanh %222 : vector<8x32xf32>
    %225 = arith.mulf %223, %224 : vector<8x32xf32>
    %cst_84 = arith.constant dense<0.000000e+00> : vector<8x128xf32>
    %226 = tpu.matmul %225, %2, %cst_84 {dimension_numbers = #tpu.dot_dimension_numbers<[1], [0], [0], [1], [0, 0, 1, 1], [], []>} : vector<8x32xf32>, vector<32x128xf32>, vector<8x128xf32> -> vector<8x128xf32>
    %cst_85 = arith.constant dense<0.000000e+00> : vector<8x128xf32>
    %227 = tpu.matmul %201, %3, %cst_85 {dimension_numbers = #tpu.dot_dimension_numbers<[1], [0], [0], [1], [0, 0, 1, 1], [], []>} : vector<8x32xf32>, vector<32x128xf32>, vector<8x128xf32> -> vector<8x128xf32>
    %228 = arith.addf %226, %227 : vector<8x128xf32>
    %229 = arith.addf %228, %9 : vector<8x128xf32>
    %230 = arith.negf %229 : vector<8x128xf32>
    %231 = math.exp %230 : vector<8x128xf32>
    %cst_86 = arith.constant 1.000000e+00 : f32
    %232 = vector.broadcast %cst_86 : f32 to vector<8x128xf32>
    %233 = arith.addf %232, %231 : vector<8x128xf32>
    %234 = arith.divf %232, %233 : vector<8x128xf32>
    %235 = math.tanh %229 : vector<8x128xf32>
    %c96_i32_87 = arith.constant 96 : i32
    %236 = tpu.dynamic_rotate %234 by %c96_i32_87 dim 1 : vector<8x128xf32>, i32 -> vector<8x128xf32>
    %c64_i32_88 = arith.constant 64 : i32
    %237 = tpu.dynamic_rotate %235 by %c64_i32_88 dim 1 : vector<8x128xf32>, i32 -> vector<8x128xf32>
    %c32_i32_89 = arith.constant 32 : i32
    %238 = tpu.dynamic_rotate %234 by %c32_i32_89 dim 1 : vector<8x128xf32>, i32 -> vector<8x128xf32>
    %239 = vector.extract_strided_slice %236 {offsets = [0, 0], sizes = [8, 32], strides = [1, 1]} : vector<8x128xf32> to vector<8x32xf32>
    %240 = arith.mulf %239, %198 : vector<8x32xf32>
    %241 = vector.extract_strided_slice %234 {offsets = [0, 0], sizes = [8, 32], strides = [1, 1]} : vector<8x128xf32> to vector<8x32xf32>
    %242 = vector.extract_strided_slice %237 {offsets = [0, 0], sizes = [8, 32], strides = [1, 1]} : vector<8x128xf32> to vector<8x32xf32>
    %243 = arith.mulf %241, %242 : vector<8x32xf32>
    %244 = arith.addf %240, %243 : vector<8x32xf32>
    %245 = vector.extract_strided_slice %238 {offsets = [0, 0], sizes = [8, 32], strides = [1, 1]} : vector<8x128xf32> to vector<8x32xf32>
    %246 = math.tanh %244 : vector<8x32xf32>
    %247 = arith.mulf %245, %246 : vector<8x32xf32>
    %c5 = arith.constant 5 : index
    %c0_90 = arith.constant 0 : index
    %c0_91 = arith.constant 0 : index
    %248 = vector.load %arg0[%c5, %c0_90, %c0_91] : memref<8x8x32xf32, #tpu.memory_space<vmem>>, vector<1x8x32xf32>
    %249 = vector.shape_cast %248 : vector<1x8x32xf32> to vector<8x32xf32>
    %cst_92 = arith.constant dense<0.000000e+00> : vector<8x128xf32>
    %250 = tpu.matmul %249, %0, %cst_92 {dimension_numbers = #tpu.dot_dimension_numbers<[1], [0], [0], [1], [0, 0, 1, 1], [], []>} : vector<8x32xf32>, vector<32x128xf32>, vector<8x128xf32> -> vector<8x128xf32>
    %cst_93 = arith.constant dense<0.000000e+00> : vector<8x128xf32>
    %251 = tpu.matmul %225, %1, %cst_93 {dimension_numbers = #tpu.dot_dimension_numbers<[1], [0], [0], [1], [0, 0, 1, 1], [], []>} : vector<8x32xf32>, vector<32x128xf32>, vector<8x128xf32> -> vector<8x128xf32>
    %252 = arith.addf %250, %251 : vector<8x128xf32>
    %253 = arith.addf %252, %6 : vector<8x128xf32>
    %254 = arith.negf %253 : vector<8x128xf32>
    %255 = math.exp %254 : vector<8x128xf32>
    %cst_94 = arith.constant 1.000000e+00 : f32
    %256 = vector.broadcast %cst_94 : f32 to vector<8x128xf32>
    %257 = arith.addf %256, %255 : vector<8x128xf32>
    %258 = arith.divf %256, %257 : vector<8x128xf32>
    %259 = math.tanh %253 : vector<8x128xf32>
    %c96_i32_95 = arith.constant 96 : i32
    %260 = tpu.dynamic_rotate %258 by %c96_i32_95 dim 1 : vector<8x128xf32>, i32 -> vector<8x128xf32>
    %c64_i32_96 = arith.constant 64 : i32
    %261 = tpu.dynamic_rotate %259 by %c64_i32_96 dim 1 : vector<8x128xf32>, i32 -> vector<8x128xf32>
    %c32_i32_97 = arith.constant 32 : i32
    %262 = tpu.dynamic_rotate %258 by %c32_i32_97 dim 1 : vector<8x128xf32>, i32 -> vector<8x128xf32>
    %263 = vector.extract_strided_slice %260 {offsets = [0, 0], sizes = [8, 32], strides = [1, 1]} : vector<8x128xf32> to vector<8x32xf32>
    %264 = arith.mulf %263, %222 : vector<8x32xf32>
    %265 = vector.extract_strided_slice %258 {offsets = [0, 0], sizes = [8, 32], strides = [1, 1]} : vector<8x128xf32> to vector<8x32xf32>
    %266 = vector.extract_strided_slice %261 {offsets = [0, 0], sizes = [8, 32], strides = [1, 1]} : vector<8x128xf32> to vector<8x32xf32>
    %267 = arith.mulf %265, %266 : vector<8x32xf32>
    %268 = arith.addf %264, %267 : vector<8x32xf32>
    %269 = vector.extract_strided_slice %262 {offsets = [0, 0], sizes = [8, 32], strides = [1, 1]} : vector<8x128xf32> to vector<8x32xf32>
    %270 = math.tanh %268 : vector<8x32xf32>
    %271 = arith.mulf %269, %270 : vector<8x32xf32>
    %cst_98 = arith.constant dense<0.000000e+00> : vector<8x128xf32>
    %272 = tpu.matmul %271, %2, %cst_98 {dimension_numbers = #tpu.dot_dimension_numbers<[1], [0], [0], [1], [0, 0, 1, 1], [], []>} : vector<8x32xf32>, vector<32x128xf32>, vector<8x128xf32> -> vector<8x128xf32>
    %cst_99 = arith.constant dense<0.000000e+00> : vector<8x128xf32>
    %273 = tpu.matmul %247, %3, %cst_99 {dimension_numbers = #tpu.dot_dimension_numbers<[1], [0], [0], [1], [0, 0, 1, 1], [], []>} : vector<8x32xf32>, vector<32x128xf32>, vector<8x128xf32> -> vector<8x128xf32>
    %274 = arith.addf %272, %273 : vector<8x128xf32>
    %275 = arith.addf %274, %9 : vector<8x128xf32>
    %276 = arith.negf %275 : vector<8x128xf32>
    %277 = math.exp %276 : vector<8x128xf32>
    %cst_100 = arith.constant 1.000000e+00 : f32
    %278 = vector.broadcast %cst_100 : f32 to vector<8x128xf32>
    %279 = arith.addf %278, %277 : vector<8x128xf32>
    %280 = arith.divf %278, %279 : vector<8x128xf32>
    %281 = math.tanh %275 : vector<8x128xf32>
    %c96_i32_101 = arith.constant 96 : i32
    %282 = tpu.dynamic_rotate %280 by %c96_i32_101 dim 1 : vector<8x128xf32>, i32 -> vector<8x128xf32>
    %c64_i32_102 = arith.constant 64 : i32
    %283 = tpu.dynamic_rotate %281 by %c64_i32_102 dim 1 : vector<8x128xf32>, i32 -> vector<8x128xf32>
    %c32_i32_103 = arith.constant 32 : i32
    %284 = tpu.dynamic_rotate %280 by %c32_i32_103 dim 1 : vector<8x128xf32>, i32 -> vector<8x128xf32>
    %285 = vector.extract_strided_slice %282 {offsets = [0, 0], sizes = [8, 32], strides = [1, 1]} : vector<8x128xf32> to vector<8x32xf32>
    %286 = arith.mulf %285, %244 : vector<8x32xf32>
    %287 = vector.extract_strided_slice %280 {offsets = [0, 0], sizes = [8, 32], strides = [1, 1]} : vector<8x128xf32> to vector<8x32xf32>
    %288 = vector.extract_strided_slice %283 {offsets = [0, 0], sizes = [8, 32], strides = [1, 1]} : vector<8x128xf32> to vector<8x32xf32>
    %289 = arith.mulf %287, %288 : vector<8x32xf32>
    %290 = arith.addf %286, %289 : vector<8x32xf32>
    %291 = vector.extract_strided_slice %284 {offsets = [0, 0], sizes = [8, 32], strides = [1, 1]} : vector<8x128xf32> to vector<8x32xf32>
    %292 = math.tanh %290 : vector<8x32xf32>
    %293 = arith.mulf %291, %292 : vector<8x32xf32>
    %c6 = arith.constant 6 : index
    %c0_104 = arith.constant 0 : index
    %c0_105 = arith.constant 0 : index
    %294 = vector.load %arg0[%c6, %c0_104, %c0_105] : memref<8x8x32xf32, #tpu.memory_space<vmem>>, vector<1x8x32xf32>
    %295 = vector.shape_cast %294 : vector<1x8x32xf32> to vector<8x32xf32>
    %cst_106 = arith.constant dense<0.000000e+00> : vector<8x128xf32>
    %296 = tpu.matmul %295, %0, %cst_106 {dimension_numbers = #tpu.dot_dimension_numbers<[1], [0], [0], [1], [0, 0, 1, 1], [], []>} : vector<8x32xf32>, vector<32x128xf32>, vector<8x128xf32> -> vector<8x128xf32>
    %cst_107 = arith.constant dense<0.000000e+00> : vector<8x128xf32>
    %297 = tpu.matmul %271, %1, %cst_107 {dimension_numbers = #tpu.dot_dimension_numbers<[1], [0], [0], [1], [0, 0, 1, 1], [], []>} : vector<8x32xf32>, vector<32x128xf32>, vector<8x128xf32> -> vector<8x128xf32>
    %298 = arith.addf %296, %297 : vector<8x128xf32>
    %299 = arith.addf %298, %6 : vector<8x128xf32>
    %300 = arith.negf %299 : vector<8x128xf32>
    %301 = math.exp %300 : vector<8x128xf32>
    %cst_108 = arith.constant 1.000000e+00 : f32
    %302 = vector.broadcast %cst_108 : f32 to vector<8x128xf32>
    %303 = arith.addf %302, %301 : vector<8x128xf32>
    %304 = arith.divf %302, %303 : vector<8x128xf32>
    %305 = math.tanh %299 : vector<8x128xf32>
    %c96_i32_109 = arith.constant 96 : i32
    %306 = tpu.dynamic_rotate %304 by %c96_i32_109 dim 1 : vector<8x128xf32>, i32 -> vector<8x128xf32>
    %c64_i32_110 = arith.constant 64 : i32
    %307 = tpu.dynamic_rotate %305 by %c64_i32_110 dim 1 : vector<8x128xf32>, i32 -> vector<8x128xf32>
    %c32_i32_111 = arith.constant 32 : i32
    %308 = tpu.dynamic_rotate %304 by %c32_i32_111 dim 1 : vector<8x128xf32>, i32 -> vector<8x128xf32>
    %309 = vector.extract_strided_slice %306 {offsets = [0, 0], sizes = [8, 32], strides = [1, 1]} : vector<8x128xf32> to vector<8x32xf32>
    %310 = arith.mulf %309, %268 : vector<8x32xf32>
    %311 = vector.extract_strided_slice %304 {offsets = [0, 0], sizes = [8, 32], strides = [1, 1]} : vector<8x128xf32> to vector<8x32xf32>
    %312 = vector.extract_strided_slice %307 {offsets = [0, 0], sizes = [8, 32], strides = [1, 1]} : vector<8x128xf32> to vector<8x32xf32>
    %313 = arith.mulf %311, %312 : vector<8x32xf32>
    %314 = arith.addf %310, %313 : vector<8x32xf32>
    %315 = vector.extract_strided_slice %308 {offsets = [0, 0], sizes = [8, 32], strides = [1, 1]} : vector<8x128xf32> to vector<8x32xf32>
    %316 = math.tanh %314 : vector<8x32xf32>
    %317 = arith.mulf %315, %316 : vector<8x32xf32>
    %cst_112 = arith.constant dense<0.000000e+00> : vector<8x128xf32>
    %318 = tpu.matmul %317, %2, %cst_112 {dimension_numbers = #tpu.dot_dimension_numbers<[1], [0], [0], [1], [0, 0, 1, 1], [], []>} : vector<8x32xf32>, vector<32x128xf32>, vector<8x128xf32> -> vector<8x128xf32>
    %cst_113 = arith.constant dense<0.000000e+00> : vector<8x128xf32>
    %319 = tpu.matmul %293, %3, %cst_113 {dimension_numbers = #tpu.dot_dimension_numbers<[1], [0], [0], [1], [0, 0, 1, 1], [], []>} : vector<8x32xf32>, vector<32x128xf32>, vector<8x128xf32> -> vector<8x128xf32>
    %320 = arith.addf %318, %319 : vector<8x128xf32>
    %321 = arith.addf %320, %9 : vector<8x128xf32>
    %322 = arith.negf %321 : vector<8x128xf32>
    %323 = math.exp %322 : vector<8x128xf32>
    %cst_114 = arith.constant 1.000000e+00 : f32
    %324 = vector.broadcast %cst_114 : f32 to vector<8x128xf32>
    %325 = arith.addf %324, %323 : vector<8x128xf32>
    %326 = arith.divf %324, %325 : vector<8x128xf32>
    %327 = math.tanh %321 : vector<8x128xf32>
    %c96_i32_115 = arith.constant 96 : i32
    %328 = tpu.dynamic_rotate %326 by %c96_i32_115 dim 1 : vector<8x128xf32>, i32 -> vector<8x128xf32>
    %c64_i32_116 = arith.constant 64 : i32
    %329 = tpu.dynamic_rotate %327 by %c64_i32_116 dim 1 : vector<8x128xf32>, i32 -> vector<8x128xf32>
    %c32_i32_117 = arith.constant 32 : i32
    %330 = tpu.dynamic_rotate %326 by %c32_i32_117 dim 1 : vector<8x128xf32>, i32 -> vector<8x128xf32>
    %331 = vector.extract_strided_slice %328 {offsets = [0, 0], sizes = [8, 32], strides = [1, 1]} : vector<8x128xf32> to vector<8x32xf32>
    %332 = arith.mulf %331, %290 : vector<8x32xf32>
    %333 = vector.extract_strided_slice %326 {offsets = [0, 0], sizes = [8, 32], strides = [1, 1]} : vector<8x128xf32> to vector<8x32xf32>
    %334 = vector.extract_strided_slice %329 {offsets = [0, 0], sizes = [8, 32], strides = [1, 1]} : vector<8x128xf32> to vector<8x32xf32>
    %335 = arith.mulf %333, %334 : vector<8x32xf32>
    %336 = arith.addf %332, %335 : vector<8x32xf32>
    %337 = vector.extract_strided_slice %330 {offsets = [0, 0], sizes = [8, 32], strides = [1, 1]} : vector<8x128xf32> to vector<8x32xf32>
    %338 = math.tanh %336 : vector<8x32xf32>
    %339 = arith.mulf %337, %338 : vector<8x32xf32>
    %c7 = arith.constant 7 : index
    %c0_118 = arith.constant 0 : index
    %c0_119 = arith.constant 0 : index
    %340 = vector.load %arg0[%c7, %c0_118, %c0_119] : memref<8x8x32xf32, #tpu.memory_space<vmem>>, vector<1x8x32xf32>
    %341 = vector.shape_cast %340 : vector<1x8x32xf32> to vector<8x32xf32>
    %cst_120 = arith.constant dense<0.000000e+00> : vector<8x128xf32>
    %342 = tpu.matmul %341, %0, %cst_120 {dimension_numbers = #tpu.dot_dimension_numbers<[1], [0], [0], [1], [0, 0, 1, 1], [], []>} : vector<8x32xf32>, vector<32x128xf32>, vector<8x128xf32> -> vector<8x128xf32>
    %cst_121 = arith.constant dense<0.000000e+00> : vector<8x128xf32>
    %343 = tpu.matmul %317, %1, %cst_121 {dimension_numbers = #tpu.dot_dimension_numbers<[1], [0], [0], [1], [0, 0, 1, 1], [], []>} : vector<8x32xf32>, vector<32x128xf32>, vector<8x128xf32> -> vector<8x128xf32>
    %344 = arith.addf %342, %343 : vector<8x128xf32>
    %345 = arith.addf %344, %6 : vector<8x128xf32>
    %346 = arith.negf %345 : vector<8x128xf32>
    %347 = math.exp %346 : vector<8x128xf32>
    %cst_122 = arith.constant 1.000000e+00 : f32
    %348 = vector.broadcast %cst_122 : f32 to vector<8x128xf32>
    %349 = arith.addf %348, %347 : vector<8x128xf32>
    %350 = arith.divf %348, %349 : vector<8x128xf32>
    %351 = math.tanh %345 : vector<8x128xf32>
    %c96_i32_123 = arith.constant 96 : i32
    %352 = tpu.dynamic_rotate %350 by %c96_i32_123 dim 1 : vector<8x128xf32>, i32 -> vector<8x128xf32>
    %c64_i32_124 = arith.constant 64 : i32
    %353 = tpu.dynamic_rotate %351 by %c64_i32_124 dim 1 : vector<8x128xf32>, i32 -> vector<8x128xf32>
    %c32_i32_125 = arith.constant 32 : i32
    %354 = tpu.dynamic_rotate %350 by %c32_i32_125 dim 1 : vector<8x128xf32>, i32 -> vector<8x128xf32>
    %355 = vector.extract_strided_slice %352 {offsets = [0, 0], sizes = [8, 32], strides = [1, 1]} : vector<8x128xf32> to vector<8x32xf32>
    %356 = arith.mulf %355, %314 : vector<8x32xf32>
    %357 = vector.extract_strided_slice %350 {offsets = [0, 0], sizes = [8, 32], strides = [1, 1]} : vector<8x128xf32> to vector<8x32xf32>
    %358 = vector.extract_strided_slice %353 {offsets = [0, 0], sizes = [8, 32], strides = [1, 1]} : vector<8x128xf32> to vector<8x32xf32>
    %359 = arith.mulf %357, %358 : vector<8x32xf32>
    %360 = arith.addf %356, %359 : vector<8x32xf32>
    %361 = vector.extract_strided_slice %354 {offsets = [0, 0], sizes = [8, 32], strides = [1, 1]} : vector<8x128xf32> to vector<8x32xf32>
    %362 = math.tanh %360 : vector<8x32xf32>
    %363 = arith.mulf %361, %362 : vector<8x32xf32>
    %cst_126 = arith.constant dense<0.000000e+00> : vector<8x128xf32>
    %364 = tpu.matmul %363, %2, %cst_126 {dimension_numbers = #tpu.dot_dimension_numbers<[1], [0], [0], [1], [0, 0, 1, 1], [], []>} : vector<8x32xf32>, vector<32x128xf32>, vector<8x128xf32> -> vector<8x128xf32>
    %cst_127 = arith.constant dense<0.000000e+00> : vector<8x128xf32>
    %365 = tpu.matmul %339, %3, %cst_127 {dimension_numbers = #tpu.dot_dimension_numbers<[1], [0], [0], [1], [0, 0, 1, 1], [], []>} : vector<8x32xf32>, vector<32x128xf32>, vector<8x128xf32> -> vector<8x128xf32>
    %366 = arith.addf %364, %365 : vector<8x128xf32>
    %367 = arith.addf %366, %9 : vector<8x128xf32>
    %368 = arith.negf %367 : vector<8x128xf32>
    %369 = math.exp %368 : vector<8x128xf32>
    %cst_128 = arith.constant 1.000000e+00 : f32
    %370 = vector.broadcast %cst_128 : f32 to vector<8x128xf32>
    %371 = arith.addf %370, %369 : vector<8x128xf32>
    %372 = arith.divf %370, %371 : vector<8x128xf32>
    %373 = math.tanh %367 : vector<8x128xf32>
    %c96_i32_129 = arith.constant 96 : i32
    %374 = tpu.dynamic_rotate %372 by %c96_i32_129 dim 1 : vector<8x128xf32>, i32 -> vector<8x128xf32>
    %c64_i32_130 = arith.constant 64 : i32
    %375 = tpu.dynamic_rotate %373 by %c64_i32_130 dim 1 : vector<8x128xf32>, i32 -> vector<8x128xf32>
    %c32_i32_131 = arith.constant 32 : i32
    %376 = tpu.dynamic_rotate %372 by %c32_i32_131 dim 1 : vector<8x128xf32>, i32 -> vector<8x128xf32>
    %377 = vector.extract_strided_slice %374 {offsets = [0, 0], sizes = [8, 32], strides = [1, 1]} : vector<8x128xf32> to vector<8x32xf32>
    %378 = arith.mulf %377, %336 : vector<8x32xf32>
    %379 = vector.extract_strided_slice %372 {offsets = [0, 0], sizes = [8, 32], strides = [1, 1]} : vector<8x128xf32> to vector<8x32xf32>
    %380 = vector.extract_strided_slice %375 {offsets = [0, 0], sizes = [8, 32], strides = [1, 1]} : vector<8x128xf32> to vector<8x32xf32>
    %381 = arith.mulf %379, %380 : vector<8x32xf32>
    %382 = arith.addf %378, %381 : vector<8x32xf32>
    %383 = vector.extract_strided_slice %376 {offsets = [0, 0], sizes = [8, 32], strides = [1, 1]} : vector<8x128xf32> to vector<8x32xf32>
    %384 = math.tanh %382 : vector<8x32xf32>
    %385 = arith.mulf %383, %384 : vector<8x32xf32>
    %c0_132 = arith.constant 0 : index
    %c0_133 = arith.constant 0 : index
    %c0_134 = arith.constant 0 : index
    %386 = vector.load %arg12[%c0_132, %c0_133, %c0_134] : memref<2x8x32xf32, #tpu.memory_space<vmem>>, vector<1x8x32xf32>
    %387 = vector.shape_cast %386 : vector<1x8x32xf32> to vector<8x32xf32>
    %388 = vector.shape_cast %363 : vector<8x32xf32> to vector<1x8x32xf32>
    tpu.vector_store %arg12[%c0_132, %c0_133, %c0_134], %388 {strides = array<i32>} : memref<2x8x32xf32, #tpu.memory_space<vmem>>, vector<1x8x32xf32>,
    %c1_135 = arith.constant 1 : index
    %c0_136 = arith.constant 0 : index
    %c0_137 = arith.constant 0 : index
    %389 = vector.load %arg12[%c1_135, %c0_136, %c0_137] : memref<2x8x32xf32, #tpu.memory_space<vmem>>, vector<1x8x32xf32>
    %390 = vector.shape_cast %389 : vector<1x8x32xf32> to vector<8x32xf32>
    %391 = vector.shape_cast %385 : vector<8x32xf32> to vector<1x8x32xf32>
    tpu.vector_store %arg12[%c1_135, %c0_136, %c0_137], %391 {strides = array<i32>} : memref<2x8x32xf32, #tpu.memory_space<vmem>>, vector<1x8x32xf32>,
    %c0_138 = arith.constant 0 : index
    %c0_139 = arith.constant 0 : index
    %c0_140 = arith.constant 0 : index
    %392 = vector.load %arg13[%c0_138, %c0_139, %c0_140] : memref<2x8x32xf32, #tpu.memory_space<vmem>>, vector<1x8x32xf32>
    %393 = vector.shape_cast %392 : vector<1x8x32xf32> to vector<8x32xf32>
    %394 = vector.shape_cast %360 : vector<8x32xf32> to vector<1x8x32xf32>
    tpu.vector_store %arg13[%c0_138, %c0_139, %c0_140], %394 {strides = array<i32>} : memref<2x8x32xf32, #tpu.memory_space<vmem>>, vector<1x8x32xf32>,
    %c1_141 = arith.constant 1 : index
    %c0_142 = arith.constant 0 : index
    %c0_143 = arith.constant 0 : index
    %395 = vector.load %arg13[%c1_141, %c0_142, %c0_143] : memref<2x8x32xf32, #tpu.memory_space<vmem>>, vector<1x8x32xf32>
    %396 = vector.shape_cast %395 : vector<1x8x32xf32> to vector<8x32xf32>
    %397 = vector.shape_cast %382 : vector<8x32xf32> to vector<1x8x32xf32>
    tpu.vector_store %arg13[%c1_141, %c0_142, %c0_143], %397 {strides = array<i32>} : memref<2x8x32xf32, #tpu.memory_space<vmem>>, vector<1x8x32xf32>,
    %c0_144 = arith.constant 0 : index
    %c0_145 = arith.constant 0 : index
    %398 = vector.load %arg9[%c0_144, %c0_145] : memref<32x1xf32, #tpu.memory_space<vmem>>, vector<32x1xf32>
    %cst_146 = arith.constant dense<0.000000e+00> : vector<8x1xf32>
    %399 = tpu.matmul %385, %398, %cst_146 {dimension_numbers = #tpu.dot_dimension_numbers<[1], [0], [0], [1], [0, 0, 1, 1], [], []>} : vector<8x32xf32>, vector<32x1xf32>, vector<8x1xf32> -> vector<8x1xf32>
    %c0_147 = arith.constant 0 : index
    %c0_148 = arith.constant 0 : index
    %400 = vector.load %arg10[%c0_147, %c0_148] : memref<1x1xf32, #tpu.memory_space<vmem>>, vector<1x1xf32>
    %401 = vector.broadcast %400 : vector<1x1xf32> to vector<8x1xf32>
    %402 = arith.addf %399, %401 : vector<8x1xf32>
    %403 = arith.negf %402 : vector<8x1xf32>
    %404 = math.exp %403 : vector<8x1xf32>
    %cst_149 = arith.constant 1.000000e+00 : f32
    %405 = vector.broadcast %cst_149 : f32 to vector<8x1xf32>
    %406 = arith.addf %405, %404 : vector<8x1xf32>
    %407 = arith.divf %405, %406 : vector<8x1xf32>
    %c0_150 = arith.constant 0 : index
    %c0_151 = arith.constant 0 : index
    %408 = vector.load %arg11[%c0_150, %c0_151] : memref<8x1xf32, #tpu.memory_space<vmem>>, vector<8x1xf32>
    tpu.vector_store %arg11[%c0_150, %c0_151], %407 {strides = array<i32>} : memref<8x1xf32, #tpu.memory_space<vmem>>, vector<8x1xf32>,
    return
  }
}

</mosaic_0001>

<bundles_post_ra>
// kernel: sentiment_rnn_forward.1
= control target key start
LH: loop header
LB: loop body
LE: loop exit
PB: predicated region body
PF: predicated region fallthrough
CT: control target
= control target key end

     0   :  { %v3754_v0 = vmov 0.0|0.0   ;;  %vm3755_vm0 = vmmov 0   ;;  %v3756_v8 = vmov 0.0   ;;  %vm80_vm1 = vcmask 261120   ;;  %s3757_s26 = smov 32   ;;  %s3758_s27 = smov 96   ;;  %s4323_s4 = inlined_call_operand.vmem [shape: f32[32,128], index: 4, kind: input, shape index: {}]   ;;  %s4324_s3 = inlined_call_operand.vmem [shape: f32[32,128], index: 3, kind: input, shape index: {}]   ;;  %s4325_s1 = inlined_call_operand.vmem [shape: f32[2,8,32], index: 1, kind: input, shape index: {}]   ;;  %s4326_s0 = inlined_call_operand.vmem [shape: f32[8,8,32], index: 0, kind: input, shape index: {}]   ;;  %s4327_s5 = inlined_call_operand.vmem [shape: f32[1,128], index: 5, kind: input, shape index: {}]   ;;  %s4328_s7 = inlined_call_operand.vmem [shape: f32[32,128], index: 7, kind: input, shape index: {}]   ;;  %s4329_s6 = inlined_call_operand.vmem [shape: f32[32,128], index: 6, kind: input, shape index: {}]   ;;  %s4330_s2 = inlined_call_operand.vmem [shape: f32[2,8,32], index: 2, kind: input, shape index: {}]   ;;  %s4331_s8 = inlined_call_operand.vmem [shape: f32[1,128], index: 8, kind: input, shape index: {}]   ;;  %s4332_s13 = inlined_call_operand.vmem [shape: f32[2,8,32], index: 13, kind: output, shape index: {2}]   ;;  %s4333_s12 = inlined_call_operand.vmem [shape: f32[2,8,32], index: 12, kind: output, shape index: {1}]   ;;  %s4334_s9 = inlined_call_operand.vmem [shape: f32[32,1], index: 9, kind: input, shape index: {}]   ;;  %s4335_s10 = inlined_call_operand.<no memory space> [shape: f32[1,1], index: 10, kind: input, shape index: {}]   ;;  %s4336_s11 = inlined_call_operand.vmem [shape: f32[8,1], index: 11, kind: output, shape index: {0}]  }
   0x1   :  { %3416 = vmatprep.subr.bf16.mxu0 %v3754_v0  ;;  %3422 = vmatprep.subr.bf16.mxu1 %v3754_v0  ;;  %v47_v1 = vld [vmem:[%s4323_s4] sm:$0xff]  ;;  %v48_v2 = vld [vmem:[%s4323_s4 + $0x8] sm:$0xff]  ;;  %v49_v6 = vld [vmem:[%s4323_s4 + $0x10] sm:$0xff]  ;;  %vm2810_vm2 = vcmask 7168  }
   0x2   :  { %v43_v3 = vld [vmem:[%s4324_s3] sm:$0xff]  ;;  %v3841_v4 = vpack.c.bf16 %v48_v2, %v47_v1  ;;  %v44_v5 = vld [vmem:[%s4324_s3 + $0x8] sm:$0xff]  ;;  %v50_v7 = vld [vmem:[%s4323_s4 + $0x18] sm:$0xff]  ;;  %3061 = vmatprep.mubr.msk.f32.mxu0 %vm3755_vm0, %v3756_v8  ;;  %3072 = vmatprep.mubr.msk.f32.mxu1 %vm3755_vm0, %v3756_v8 }
   0x3   :  { %v3856_v9 = vpack.c.bf16 %v44_v5, %v43_v3  ;;  %v45_v10 = vld [vmem:[%s4324_s3 + $0x10] sm:$0xff]  ;;  %v46_v11 = vld [vmem:[%s4324_s3 + $0x18] sm:$0xff]  ;;  %v3865_v12 = vpack.c.bf16 %v50_v7, %v49_v6  ;;  %v73_v14 = vld [vmem:[%s4325_s1] sm:$0xff] }
   0x4   :  { %3418 = vmatpush3.bf16.msra.mxu0 %v3841_v4  ;;  %v3869_v13 = vpack.c.bf16 %v46_v11, %v45_v10  ;;  %v79_v15 = vld [vmem:[%s4326_s0] sm:$0xff]  ;;  %v56_v27 = vld [vmem:[%s4328_s7 + $0x8] sm:$0xff]  ;;  %v57_v29 = vld [vmem:[%s4328_s7 + $0x10] sm:$0xff] }
   0x5   :  { %3424 = vmatpush3.bf16.msra.mxu1 %v3856_v9  ;;  %3419 = vmatprep.subr.bf16.mxu0 %v3754_v0  ;;  %v3891_v17 = vld [vmem:[%s4327_s5] ss:$0 sm:$0xff]  ;;  %v58_v30 = vld [vmem:[%s4328_s7 + $0x18] sm:$0xff]  ;;  %v52_v33 = vld [vmem:[%s4329_s6 + $0x8] sm:$0xff] }
   0x6   :  { %3425 = vmatprep.subr.bf16.mxu1 %v3754_v0  ;;  %v55_v26 = vld [vmem:[%s4328_s7] sm:$0xff]  ;;  %v3910_v31 = vpack.c.bf16 %v58_v30, %v57_v29  ;;  %v53_v34 = vld [vmem:[%s4329_s6 + $0x10] sm:$0xff]  ;;  %v54_v36 = vld [vmem:[%s4329_s6 + $0x18] sm:$0xff] }
   0x7   :  { %v3900_v28 = vpack.c.bf16 %v56_v27, %v55_v26  ;;  %v51_v32 = vld [vmem:[%s4329_s6] sm:$0xff]  ;;  %v2826_v37 = vld [vmem:[%s4325_s1 + $0x8] sm:$0xff]  ;;  %v3932_v39 = vpack.c.bf16 %v54_v36, %v53_v34  ;;  %s3759_s1 = smov 64  }
   0x8   :  { %3421 = vmatpush3.bf16.msra.mxu0 %v3865_v12  ;;  %v3922_v35 = vpack.c.bf16 %v52_v33, %v51_v32  ;;  %v74_v42 = vld [vmem:[%s4330_s2] sm:$0xff]  ;;  %v2834_v50 = vld [vmem:[%s4326_s0 + $0x8] sm:$0xff] }
   0x9   :  { %3427 = vmatpush3.bf16.msra.mxu1 %v3869_v13  ;;  %3428 = vmatprep.subr.bf16.mxu0 %v3754_v0  ;;  %v3980_v53 = vld [vmem:[%s4331_s8] ss:$0 sm:$0xff] }
   0xa   :  { %3434 = vmatprep.subr.bf16.mxu1 %v3754_v0 }
   0xb   :  { %3062 = vmatmul.mubr.msk.f32.vlgmr.msra.gmra.mrb[0].mxu0 %vm80_vm1, %v73_v14 }
   0xc   :  { %3073 = vmatmul.mubr.msk.f32.vlgmr.msra.gmra.mrb[0].mxu1 %vm80_vm1, %v79_v15  ;;  %3083 = vmatprep.mubr.msk.f32.mxu0 %vm3755_vm0, %v3756_v8 }
   0xd   :  { %3094 = vmatprep.mubr.msk.f32.mxu1 %vm3755_vm0, %v3756_v8  ;;  %3430 = vmatpush3.bf16.msra.mxu0 %v3900_v28 }
   0xe   :  { %3431 = vmatprep.subr.bf16.mxu0 %v3754_v0  ;;  %3436 = vmatpush3.bf16.msra.mxu1 %v3922_v35 }
   0xf   :  { %3437 = vmatprep.subr.bf16.mxu1 %v3754_v0 }
  0x11   :  { %3433 = vmatpush3.bf16.msra.mxu0 %v3910_v31 }
  0x12   :  { %3440 = vmatprep.subr.bf16.mxu0 %v3754_v0  ;;  %3439 = vmatpush3.bf16.msra.mxu1 %v3932_v39 }
  0x13   :  { %3446 = vmatprep.subr.bf16.mxu1 %v3754_v0 }
  0x14   :  { %3084 = vmatmul.mubr.msk.f32.vlgmr.msra.gmra.mrb[2].mxu0 %vm80_vm1, %v2826_v37  ;;  %v2841_v37 = vld [vmem:[%s4326_s0 + $0x10] sm:$0xff] }
  0x15   :  { %3442 = vmatpush3.bf16.msra.mxu0 %v3841_v4  ;;  %3105 = vmatprep.mubr.msk.f32.mxu0 %vm3755_vm0, %v3756_v8 }
  0x16   :  { %3443 = vmatprep.subr.bf16.mxu0 %v3754_v0 }
  0x19   :  { %3445 = vmatpush3.bf16.msra.mxu0 %v3865_v12 }
  0x1a   :  { %3452 = vmatprep.subr.bf16.mxu0 %v3754_v0 }
  0xde   :  { %v150_v16 = vpop.f32.mrb[0].mxu0 }
  0xdf   :  { %v223_v18 = vpop.f32.mrb[0].mxu1  ;;  %v3063_v19 = vpop.f32.mrb[1].mxu0 }
  0xe0   :  { %v224_v20 = vadd.f32 %v223_v18, %v150_v16  ;;  %v3074_v21 = vpop.f32.mrb[1].mxu1  ;;  %v2827_v18 = vld [vmem:[%s4330_s2 + $0x8] sm:$0xff] }
  0xe2   :  { %v227_v22 = vadd.f32 %v3891_v17, %v224_v20 }
  0xe4   :  { %v2830_v23 = vmul.f32 -1.442695, %v227_v22 }
  0xe6   :  { %3620 = vpow2.f32 %v2830_v23 }
  0xe7   :  { %v315_v51 = vpop.f32.mrb[2].mxu0 }
  0xe8   :  { %v3085_v52 = vpop.f32.mrb[3].mxu0 }
  0xf0   :  { %v3621_v24 = vpop.eup %3620 }
  0xf1   :  { %v231_v25 = vadd.f32 1.0, %v3621_v24 }
  0xf3   :  { %3622 = vrcp.f32 %v231_v25 }
  0xf4   :  { %3624 = vtanh.f32 %v227_v22 }
  0xfd   :  { %v3623_v38 = vpop.eup %3622 }
  0xfe   :  { %239 = vrot.lane.b32.xlu1 %v3623_v38, %s3757_s26  ;;  %235 = vrot.lane.b32.xlu0 %v3623_v38, %s3758_s27  ;;  %v3625_v40 = vpop.eup %3624 }
 0x102   :  { %237 = vrot.lane.b32.xlu0 %v3625_v40, %s3759_s1 }
 0x170   :  { %v236_v41 = vpop.permute.xlu0 %235  ;;  %v240_v48 = vpop.permute.xlu1 %239 }
 0x171   :  { %v241_v44 = vmul.f32 %v236_v41, %v74_v42 }
 0x174   :  { %v238_v43 = vpop.permute.xlu0 %237 }
 0x175   :  { %v242_v45 = vmul.f32 %v3623_v38, %v238_v43 }
 0x177   :  { %v3950_v46 = vadd.f32 %v242_v45, %v241_v44 }
 0x179   :  { %3626 = vtanh.f32 %v3950_v46 }
 0x183   :  { %v3627_v47 = vpop.eup %3626 }
 0x184   :  { %v245_v49 = vmul.f32 %v3627_v47, %v240_v48 }
 0x186   :  { %3095 = vmatmul.mubr.msk.f32.vlgmr.msra.gmra.mrb[2].mxu1 %vm80_vm1, %v245_v49  ;;  %3106 = vmatmul.mubr.msk.f32.vlgmr.msra.gmra.mrb[4].mxu0 %vm80_vm1, %v245_v49 }
 0x187   :  { %3448 = vmatpush3.bf16.msra.mxu1 %v3856_v9  ;;  %3116 = vmatprep.mubr.msk.f32.mxu1 %vm3755_vm0, %v3756_v8 }
 0x188   :  { %3449 = vmatprep.subr.bf16.mxu1 %v3754_v0  ;;  %3454 = vmatpush3.bf16.msra.mxu0 %v3900_v28 }
 0x189   :  { %3455 = vmatprep.subr.bf16.mxu0 %v3754_v0  ;;  %3127 = vmatprep.mubr.msk.f32.mxu0 %vm3755_vm0, %v3756_v8 }
 0x18b   :  { %3451 = vmatpush3.bf16.msra.mxu1 %v3869_v13 }
 0x18c   :  { %3457 = vmatpush3.bf16.msra.mxu0 %v3910_v31  ;;  %3458 = vmatprep.subr.bf16.mxu1 %v3754_v0 }
 0x18d   :  { %3464 = vmatprep.subr.bf16.mxu0 %v3754_v0 }
 0x18e   :  { %3117 = vmatmul.mubr.msk.f32.vlgmr.msra.gmra.mrb[4].mxu1 %vm80_vm1, %v2834_v50 }
 0x18f   :  { %3460 = vmatpush3.bf16.msra.mxu1 %v3922_v35  ;;  %3138 = vmatprep.mubr.msk.f32.mxu1 %vm3755_vm0, %v3756_v8 }
 0x190   :  { %3461 = vmatprep.subr.bf16.mxu1 %v3754_v0 }
 0x193   :  { %3463 = vmatpush3.bf16.msra.mxu1 %v3932_v39 }
 0x194   :  { %3470 = vmatprep.subr.bf16.mxu1 %v3754_v0 }
 0x259   :  { %v388_v54 = vpop.f32.mrb[2].mxu1  ;;  %v479_v55 = vpop.f32.mrb[4].mxu0 }
 0x25a   :  { %v389_v56 = vadd.f32 %v388_v54, %v315_v51  ;;  %v3096_v57 = vpop.f32.mrb[3].mxu1  ;;  %v3107_v58 = vpop.f32.mrb[5].mxu0 }
 0x25c   :  { %v392_v59 = vadd.f32 %v3980_v53, %v389_v56 }
 0x25e   :  { %v2833_v60 = vmul.f32 -1.442695, %v392_v59  ;;  %3628 = vtanh.f32 %v392_v59 }
 0x260   :  { %3630 = vpow2.f32 %v2833_v60 }
 0x261   :  { %v552_v61 = vpop.f32.mrb[4].mxu1 }
 0x262   :  { %v553_v62 = vadd.f32 %v552_v61, %v479_v55  ;;  %v3118_v63 = vpop.f32.mrb[5].mxu1 }
 0x264   :  { %v556_v1 = vadd.f32 %v3891_v17, %v553_v62 }
 0x266   :  { %v2837_v2 = vmul.f32 -1.442695, %v556_v1  ;;  %3632 = vtanh.f32 %v556_v1 }
 0x268   :  { %v3629_v3 = vpop.eup %3628  ;;  %3634 = vpow2.f32 %v2837_v2 }
 0x269   :  { %402 = vrot.lane.b32.xlu0 %v3629_v3, %s3759_s1 }
 0x26a   :  { %v3631_v5 = vpop.eup %3630 }
 0x26b   :  { %v396_v6 = vadd.f32 1.0, %v3631_v5 }
 0x26d   :  { %3636 = vrcp.f32 %v396_v6 }
 0x270   :  { %v3633_v7 = vpop.eup %3632 }
 0x271   :  { %566 = vrot.lane.b32.xlu0 %v3633_v7, %s3759_s1 }
 0x272   :  { %v3635_v10 = vpop.eup %3634 }
 0x273   :  { %v560_v11 = vadd.f32 1.0, %v3635_v10 }
 0x275   :  { %3638 = vrcp.f32 %v560_v11 }
 0x277   :  { %v3637_v14 = vpop.eup %3636 }
 0x278   :  { %400 = vrot.lane.b32.xlu1 %v3637_v14, %s3758_s27 }
 0x27f   :  { %v3639_v15 = vpop.eup %3638 }
 0x280   :  { %568 = vrot.lane.b32.xlu0 %v3639_v15, %s3757_s26  ;;  %564 = vrot.lane.b32.xlu1 %v3639_v15, %s3758_s27 }
 0x284   :  { %404 = vrot.lane.b32.xlu1 %v3637_v14, %s3757_s26 }
 0x2db   :  { %v403_v16 = vpop.permute.xlu0 %402 }
 0x2dc   :  { %v407_v20 = vmul.f32 %v3637_v14, %v403_v16 }
 0x2e3   :  { %v567_v23 = vpop.permute.xlu0 %566 }
 0x2e4   :  { %v571_v25 = vmul.f32 %v3639_v15, %v567_v23 }
 0x2ea   :  { %v401_v19 = vpop.permute.xlu1 %400 }
 0x2eb   :  { %v406_v21 = vmul.f32 %v2827_v18, %v401_v19 }
 0x2ed   :  { %v3993_v22 = vadd.f32 %v407_v20, %v406_v21  ;;  %v2848_v21 = vld [vmem:[%s4326_s0 + $0x18] sm:$0xff] }
 0x2ef   :  { %3640 = vtanh.f32 %v3993_v22 }
 0x2f2   :  { %v565_v24 = vpop.permute.xlu1 %564  ;;  %v569_v34 = vpop.permute.xlu0 %568 }
 0x2f3   :  { %v570_v26 = vmul.f32 %v565_v24, %v3950_v46 }
 0x2f5   :  { %v3997_v27 = vadd.f32 %v571_v25, %v570_v26 }
 0x2f6   :  { %v405_v30 = vpop.permute.xlu1 %404 }
 0x2f7   :  { %3642 = vtanh.f32 %v3997_v27 }
 0x2f9   :  { %v3641_v29 = vpop.eup %3640 }
 0x2fa   :  { %v410_v32 = vmul.f32 %v3641_v29, %v405_v30 }
 0x2fc   :  { %3128 = vmatmul.mubr.msk.f32.vlgmr.msra.gmra.mrb[6].mxu0 %vm80_vm1, %v410_v32 }
 0x2fd   :  { %3466 = vmatpush3.bf16.msra.mxu0 %v3841_v4  ;;  %3149 = vmatprep.mubr.msk.f32.mxu0 %vm3755_vm0, %v3756_v8 }
 0x2fe   :  { %3467 = vmatprep.subr.bf16.mxu0 %v3754_v0 }
 0x301   :  { %v3643_v33 = vpop.eup %3642  ;;  %3469 = vmatpush3.bf16.msra.mxu0 %v3865_v12 }
 0x302   :  { %v574_v36 = vmul.f32 %v3643_v33, %v569_v34  ;;  %3476 = vmatprep.subr.bf16.mxu0 %v3754_v0 }
 0x304   :  { %3139 = vmatmul.mubr.msk.f32.vlgmr.msra.gmra.mrb[6].mxu1 %vm80_vm1, %v574_v36  ;;  %3150 = vmatmul.mubr.msk.f32.vlgmr.msra.gmra.mrb[8].mxu0 %vm80_vm1, %v574_v36 }
 0x305   :  { %3472 = vmatpush3.bf16.msra.mxu1 %v3856_v9  ;;  %3160 = vmatprep.mubr.msk.f32.mxu1 %vm3755_vm0, %v3756_v8 }
 0x306   :  { %3473 = vmatprep.subr.bf16.mxu1 %v3754_v0  ;;  %3478 = vmatpush3.bf16.msra.mxu0 %v3900_v28 }
 0x307   :  { %3479 = vmatprep.subr.bf16.mxu0 %v3754_v0  ;;  %3171 = vmatprep.mubr.msk.f32.mxu0 %vm3755_vm0, %v3756_v8 }
 0x309   :  { %3475 = vmatpush3.bf16.msra.mxu1 %v3869_v13 }
 0x30a   :  { %3481 = vmatpush3.bf16.msra.mxu0 %v3910_v31  ;;  %3482 = vmatprep.subr.bf16.mxu1 %v3754_v0 }
 0x30b   :  { %3488 = vmatprep.subr.bf16.mxu0 %v3754_v0 }
 0x30c   :  { %3161 = vmatmul.mubr.msk.f32.vlgmr.msra.gmra.mrb[8].mxu1 %vm80_vm1, %v2841_v37 }
 0x30d   :  { %3484 = vmatpush3.bf16.msra.mxu1 %v3922_v35  ;;  %3182 = vmatprep.mubr.msk.f32.mxu1 %vm3755_vm0, %v3756_v8 }
 0x30e   :  { %3485 = vmatprep.subr.bf16.mxu1 %v3754_v0 }
 0x311   :  { %3487 = vmatpush3.bf16.msra.mxu1 %v3932_v39 }
 0x312   :  { %3494 = vmatprep.subr.bf16.mxu1 %v3754_v0 }
 0x3cf   :  { %v644_v38 = vpop.f32.mrb[6].mxu0 }
 0x3d0   :  { %v3129_v40 = vpop.f32.mrb[7].mxu0 }
 0x3d7   :  { %v717_v41 = vpop.f32.mrb[6].mxu1  ;;  %v808_v42 = vpop.f32.mrb[8].mxu0 }
 0x3d8   :  { %v718_v43 = vadd.f32 %v717_v41, %v644_v38  ;;  %v3140_v44 = vpop.f32.mrb[7].mxu1  ;;  %v3151_v45 = vpop.f32.mrb[9].mxu0 }
 0x3da   :  { %v721_v46 = vadd.f32 %v3980_v53, %v718_v43 }
 0x3dc   :  { %v2840_v47 = vmul.f32 -1.442695, %v721_v46  ;;  %3644 = vtanh.f32 %v721_v46 }
 0x3de   :  { %3646 = vpow2.f32 %v2840_v47 }
 0x3df   :  { %v881_v48 = vpop.f32.mrb[8].mxu1 }
 0x3e0   :  { %v882_v49 = vadd.f32 %v881_v48, %v808_v42  ;;  %v3162_v50 = vpop.f32.mrb[9].mxu1 }
 0x3e2   :  { %v885_v51 = vadd.f32 %v3891_v17, %v882_v49 }
 0x3e4   :  { %v2844_v52 = vmul.f32 -1.442695, %v885_v51  ;;  %3648 = vtanh.f32 %v885_v51 }
 0x3e6   :  { %v3645_v54 = vpop.eup %3644  ;;  %3650 = vpow2.f32 %v2844_v52 }
 0x3e7   :  { %731 = vrot.lane.b32.xlu0 %v3645_v54, %s3759_s1 }
 0x3e8   :  { %v3647_v55 = vpop.eup %3646 }
 0x3e9   :  { %v725_v56 = vadd.f32 1.0, %v3647_v55 }
 0x3eb   :  { %3652 = vrcp.f32 %v725_v56 }
 0x3ee   :  { %v3649_v57 = vpop.eup %3648 }
 0x3ef   :  { %895 = vrot.lane.b32.xlu0 %v3649_v57, %s3759_s1 }
 0x3f0   :  { %v3651_v58 = vpop.eup %3650 }
 0x3f1   :  { %v889_v59 = vadd.f32 1.0, %v3651_v58 }
 0x3f3   :  { %3654 = vrcp.f32 %v889_v59 }
 0x3f5   :  { %v3653_v60 = vpop.eup %3652 }
 0x3f6   :  { %729 = vrot.lane.b32.xlu1 %v3653_v60, %s3758_s27 }
 0x3fd   :  { %v3655_v61 = vpop.eup %3654 }
 0x3fe   :  { %897 = vrot.lane.b32.xlu0 %v3655_v61, %s3757_s26  ;;  %893 = vrot.lane.b32.xlu1 %v3655_v61, %s3758_s27 }
 0x402   :  { %733 = vrot.lane.b32.xlu1 %v3653_v60, %s3757_s26 }
 0x459   :  { %v732_v62 = vpop.permute.xlu0 %731 }
 0x45a   :  { %v736_v1 = vmul.f32 %v3653_v60, %v732_v62 }
 0x461   :  { %v896_v5 = vpop.permute.xlu0 %895 }
 0x462   :  { %v900_v7 = vmul.f32 %v3655_v61, %v896_v5 }
 0x468   :  { %v730_v63 = vpop.permute.xlu1 %729 }
 0x469   :  { %v735_v2 = vmul.f32 %v730_v63, %v3993_v22 }
 0x46b   :  { %v4040_v3 = vadd.f32 %v736_v1, %v735_v2  ;;  %v2855_v2 = vld [vmem:[%s4326_s0 + $0x20] sm:$0xff] }
 0x46d   :  { %3656 = vtanh.f32 %v4040_v3 }
 0x470   :  { %v894_v6 = vpop.permute.xlu1 %893  ;;  %v898_v19 = vpop.permute.xlu0 %897 }
 0x471   :  { %v899_v10 = vmul.f32 %v894_v6, %v3997_v27 }
 0x473   :  { %v4044_v11 = vadd.f32 %v900_v7, %v899_v10 }
 0x474   :  { %v734_v15 = vpop.permute.xlu1 %733 }
 0x475   :  { %3658 = vtanh.f32 %v4044_v11 }
 0x477   :  { %v3657_v14 = vpop.eup %3656 }
 0x478   :  { %v739_v16 = vmul.f32 %v3657_v14, %v734_v15 }
 0x47a   :  { %3172 = vmatmul.mubr.msk.f32.vlgmr.msra.gmra.mrb[10].mxu0 %vm80_vm1, %v739_v16 }
 0x47b   :  { %3490 = vmatpush3.bf16.msra.mxu0 %v3841_v4  ;;  %3193 = vmatprep.mubr.msk.f32.mxu0 %vm3755_vm0, %v3756_v8 }
 0x47c   :  { %3491 = vmatprep.subr.bf16.mxu0 %v3754_v0 }
 0x47f   :  { %v3659_v18 = vpop.eup %3658  ;;  %3493 = vmatpush3.bf16.msra.mxu0 %v3865_v12 }
 0x480   :  { %v903_v20 = vmul.f32 %v3659_v18, %v898_v19  ;;  %3500 = vmatprep.subr.bf16.mxu0 %v3754_v0 }
 0x482   :  { %3183 = vmatmul.mubr.msk.f32.vlgmr.msra.gmra.mrb[10].mxu1 %vm80_vm1, %v903_v20  ;;  %3194 = vmatmul.mubr.msk.f32.vlgmr.msra.gmra.mrb[12].mxu0 %vm80_vm1, %v903_v20 }
 0x483   :  { %3496 = vmatpush3.bf16.msra.mxu1 %v3856_v9  ;;  %3204 = vmatprep.mubr.msk.f32.mxu1 %vm3755_vm0, %v3756_v8 }
 0x484   :  { %3497 = vmatprep.subr.bf16.mxu1 %v3754_v0  ;;  %3502 = vmatpush3.bf16.msra.mxu0 %v3900_v28 }
 0x485   :  { %3503 = vmatprep.subr.bf16.mxu0 %v3754_v0  ;;  %3215 = vmatprep.mubr.msk.f32.mxu0 %vm3755_vm0, %v3756_v8 }
 0x487   :  { %3499 = vmatpush3.bf16.msra.mxu1 %v3869_v13 }
 0x488   :  { %3505 = vmatpush3.bf16.msra.mxu0 %v3910_v31  ;;  %3506 = vmatprep.subr.bf16.mxu1 %v3754_v0 }
 0x489   :  { %3512 = vmatprep.subr.bf16.mxu0 %v3754_v0 }
 0x48a   :  { %3205 = vmatmul.mubr.msk.f32.vlgmr.msra.gmra.mrb[12].mxu1 %vm80_vm1, %v2848_v21 }
 0x48b   :  { %3508 = vmatpush3.bf16.msra.mxu1 %v3922_v35  ;;  %3226 = vmatprep.mubr.msk.f32.mxu1 %vm3755_vm0, %v3756_v8 }
 0x48c   :  { %3509 = vmatprep.subr.bf16.mxu1 %v3754_v0 }
 0x48f   :  { %3511 = vmatpush3.bf16.msra.mxu1 %v3932_v39 }
 0x490   :  { %3518 = vmatprep.subr.bf16.mxu1 %v3754_v0 }
 0x54d   :  { %v973_v22 = vpop.f32.mrb[10].mxu0 }
 0x54e   :  { %v3173_v23 = vpop.f32.mrb[11].mxu0 }
 0x555   :  { %v1046_v24 = vpop.f32.mrb[10].mxu1  ;;  %v1137_v25 = vpop.f32.mrb[12].mxu0 }
 0x556   :  { %v1047_v26 = vadd.f32 %v1046_v24, %v973_v22  ;;  %v3184_v27 = vpop.f32.mrb[11].mxu1  ;;  %v3195_v29 = vpop.f32.mrb[13].mxu0 }
 0x558   :  { %v1050_v30 = vadd.f32 %v3980_v53, %v1047_v26 }
 0x55a   :  { %v2847_v32 = vmul.f32 -1.442695, %v1050_v30  ;;  %3660 = vtanh.f32 %v1050_v30 }
 0x55c   :  { %3662 = vpow2.f32 %v2847_v32 }
 0x55d   :  { %v1210_v33 = vpop.f32.mrb[12].mxu1 }
 0x55e   :  { %v1211_v34 = vadd.f32 %v1210_v33, %v1137_v25  ;;  %v3206_v36 = vpop.f32.mrb[13].mxu1 }
 0x560   :  { %v1214_v37 = vadd.f32 %v3891_v17, %v1211_v34 }
 0x562   :  { %v2851_v38 = vmul.f32 -1.442695, %v1214_v37  ;;  %3664 = vtanh.f32 %v1214_v37 }
 0x564   :  { %v3661_v40 = vpop.eup %3660  ;;  %3666 = vpow2.f32 %v2851_v38 }
 0x565   :  { %1060 = vrot.lane.b32.xlu0 %v3661_v40, %s3759_s1 }
 0x566   :  { %v3663_v41 = vpop.eup %3662 }
 0x567   :  { %v1054_v42 = vadd.f32 1.0, %v3663_v41 }
 0x569   :  { %3668 = vrcp.f32 %v1054_v42 }
 0x56c   :  { %v3665_v43 = vpop.eup %3664 }
 0x56d   :  { %1224 = vrot.lane.b32.xlu0 %v3665_v43, %s3759_s1 }
 0x56e   :  { %v3667_v44 = vpop.eup %3666 }
 0x56f   :  { %v1218_v45 = vadd.f32 1.0, %v3667_v44 }
 0x571   :  { %3670 = vrcp.f32 %v1218_v45 }
 0x573   :  { %v3669_v46 = vpop.eup %3668 }
 0x574   :  { %1058 = vrot.lane.b32.xlu1 %v3669_v46, %s3758_s27 }
 0x57b   :  { %v3671_v47 = vpop.eup %3670 }
 0x57c   :  { %1226 = vrot.lane.b32.xlu0 %v3671_v47, %s3757_s26  ;;  %1222 = vrot.lane.b32.xlu1 %v3671_v47, %s3758_s27 }
 0x580   :  { %1062 = vrot.lane.b32.xlu1 %v3669_v46, %s3757_s26 }
 0x5d7   :  { %v1061_v48 = vpop.permute.xlu0 %1060 }
 0x5d8   :  { %v1065_v50 = vmul.f32 %v3669_v46, %v1061_v48 }
 0x5df   :  { %v1225_v54 = vpop.permute.xlu0 %1224 }
 0x5e0   :  { %v1229_v56 = vmul.f32 %v3671_v47, %v1225_v54 }
 0x5e6   :  { %v1059_v49 = vpop.permute.xlu1 %1058 }
 0x5e7   :  { %v1064_v51 = vmul.f32 %v1059_v49, %v4040_v3 }
 0x5e9   :  { %v4087_v52 = vadd.f32 %v1065_v50, %v1064_v51  ;;  %v2862_v51 = vld [vmem:[%s4326_s0 + $0x28] sm:$0xff] }
 0x5eb   :  { %3672 = vtanh.f32 %v4087_v52 }
 0x5ee   :  { %v1223_v55 = vpop.permute.xlu1 %1222  ;;  %v1227_v63 = vpop.permute.xlu0 %1226 }
 0x5ef   :  { %v1228_v57 = vmul.f32 %v1223_v55, %v4044_v11 }
 0x5f1   :  { %v4091_v58 = vadd.f32 %v1229_v56, %v1228_v57 }
 0x5f2   :  { %v1063_v60 = vpop.permute.xlu1 %1062 }
 0x5f3   :  { %3674 = vtanh.f32 %v4091_v58 }
 0x5f5   :  { %v3673_v59 = vpop.eup %3672 }
 0x5f6   :  { %v1068_v61 = vmul.f32 %v3673_v59, %v1063_v60 }
 0x5f8   :  { %3216 = vmatmul.mubr.msk.f32.vlgmr.msra.gmra.mrb[14].mxu0 %vm80_vm1, %v1068_v61 }
 0x5f9   :  { %3514 = vmatpush3.bf16.msra.mxu0 %v3841_v4  ;;  %3237 = vmatprep.mubr.msk.f32.mxu0 %vm3755_vm0, %v3756_v8 }
 0x5fa   :  { %3515 = vmatprep.subr.bf16.mxu0 %v3754_v0 }
 0x5fd   :  { %v3675_v62 = vpop.eup %3674  ;;  %3517 = vmatpush3.bf16.msra.mxu0 %v3865_v12 }
 0x5fe   :  { %v1232_v1 = vmul.f32 %v3675_v62, %v1227_v63  ;;  %3524 = vmatprep.subr.bf16.mxu0 %v3754_v0 }
 0x600   :  { %3227 = vmatmul.mubr.msk.f32.vlgmr.msra.gmra.mrb[14].mxu1 %vm80_vm1, %v1232_v1  ;;  %3238 = vmatmul.mubr.msk.f32.vlgmr.msra.gmra.mrb[16].mxu0 %vm80_vm1, %v1232_v1 }
 0x601   :  { %3520 = vmatpush3.bf16.msra.mxu1 %v3856_v9  ;;  %3248 = vmatprep.mubr.msk.f32.mxu1 %vm3755_vm0, %v3756_v8 }
 0x602   :  { %3521 = vmatprep.subr.bf16.mxu1 %v3754_v0  ;;  %3526 = vmatpush3.bf16.msra.mxu0 %v3900_v28 }
 0x603   :  { %3527 = vmatprep.subr.bf16.mxu0 %v3754_v0  ;;  %3259 = vmatprep.mubr.msk.f32.mxu0 %vm3755_vm0, %v3756_v8 }
 0x605   :  { %3523 = vmatpush3.bf16.msra.mxu1 %v3869_v13 }
 0x606   :  { %3529 = vmatpush3.bf16.msra.mxu0 %v3910_v31  ;;  %3530 = vmatprep.subr.bf16.mxu1 %v3754_v0 }
 0x607   :  { %3536 = vmatprep.subr.bf16.mxu0 %v3754_v0 }
 0x608   :  { %3249 = vmatmul.mubr.msk.f32.vlgmr.msra.gmra.mrb[16].mxu1 %vm80_vm1, %v2855_v2 }
 0x609   :  { %3532 = vmatpush3.bf16.msra.mxu1 %v3922_v35  ;;  %3270 = vmatprep.mubr.msk.f32.mxu1 %vm3755_vm0, %v3756_v8 }
 0x60a   :  { %3533 = vmatprep.subr.bf16.mxu1 %v3754_v0 }
 0x60d   :  { %3535 = vmatpush3.bf16.msra.mxu1 %v3932_v39 }
 0x60e   :  { %3542 = vmatprep.subr.bf16.mxu1 %v3754_v0 }
 0x6cb   :  { %v1302_v3 = vpop.f32.mrb[14].mxu0 }
 0x6cc   :  { %v3217_v5 = vpop.f32.mrb[15].mxu0 }
 0x6d3   :  { %v1375_v6 = vpop.f32.mrb[14].mxu1  ;;  %v1466_v7 = vpop.f32.mrb[16].mxu0 }
 0x6d4   :  { %v1376_v10 = vadd.f32 %v1375_v6, %v1302_v3  ;;  %v3228_v11 = vpop.f32.mrb[15].mxu1  ;;  %v3239_v14 = vpop.f32.mrb[17].mxu0 }
 0x6d6   :  { %v1379_v15 = vadd.f32 %v3980_v53, %v1376_v10 }
 0x6d8   :  { %v2854_v16 = vmul.f32 -1.442695, %v1379_v15  ;;  %3676 = vtanh.f32 %v1379_v15 }
 0x6da   :  { %3678 = vpow2.f32 %v2854_v16 }
 0x6db   :  { %v1539_v18 = vpop.f32.mrb[16].mxu1 }
 0x6dc   :  { %v1540_v19 = vadd.f32 %v1539_v18, %v1466_v7  ;;  %v3250_v20 = vpop.f32.mrb[17].mxu1 }
 0x6de   :  { %v1543_v21 = vadd.f32 %v3891_v17, %v1540_v19 }
 0x6e0   :  { %v2858_v22 = vmul.f32 -1.442695, %v1543_v21  ;;  %3680 = vtanh.f32 %v1543_v21 }
 0x6e2   :  { %v3677_v23 = vpop.eup %3676  ;;  %3682 = vpow2.f32 %v2858_v22 }
 0x6e3   :  { %1389 = vrot.lane.b32.xlu0 %v3677_v23, %s3759_s1 }
 0x6e4   :  { %v3679_v24 = vpop.eup %3678 }
 0x6e5   :  { %v1383_v25 = vadd.f32 1.0, %v3679_v24 }
 0x6e7   :  { %3684 = vrcp.f32 %v1383_v25 }
 0x6ea   :  { %v3681_v26 = vpop.eup %3680 }
 0x6eb   :  { %1553 = vrot.lane.b32.xlu0 %v3681_v26, %s3759_s1 }
 0x6ec   :  { %v3683_v27 = vpop.eup %3682 }
 0x6ed   :  { %v1547_v29 = vadd.f32 1.0, %v3683_v27 }
 0x6ef   :  { %3686 = vrcp.f32 %v1547_v29 }
 0x6f1   :  { %v3685_v30 = vpop.eup %3684 }
 0x6f2   :  { %1387 = vrot.lane.b32.xlu1 %v3685_v30, %s3758_s27 }
 0x6f9   :  { %v3687_v32 = vpop.eup %3686 }
 0x6fa   :  { %1555 = vrot.lane.b32.xlu0 %v3687_v32, %s3757_s26  ;;  %1551 = vrot.lane.b32.xlu1 %v3687_v32, %s3758_s27 }
 0x6fe   :  { %1391 = vrot.lane.b32.xlu1 %v3685_v30, %s3757_s26 }
 0x755   :  { %v1390_v33 = vpop.permute.xlu0 %1389 }
 0x756   :  { %v1394_v36 = vmul.f32 %v3685_v30, %v1390_v33 }
 0x75d   :  { %v1554_v40 = vpop.permute.xlu0 %1553 }
 0x75e   :  { %v1558_v42 = vmul.f32 %v3687_v32, %v1554_v40 }
 0x764   :  { %v1388_v34 = vpop.permute.xlu1 %1387 }
 0x765   :  { %v1393_v37 = vmul.f32 %v1388_v34, %v4087_v52 }
 0x767   :  { %v4134_v38 = vadd.f32 %v1394_v36, %v1393_v37  ;;  %v2869_v37 = vld [vmem:[%s4326_s0 + $0x30] sm:$0xff] }
 0x769   :  { %3688 = vtanh.f32 %v4134_v38 }
 0x76c   :  { %v1552_v41 = vpop.permute.xlu1 %1551  ;;  %v1556_v49 = vpop.permute.xlu0 %1555 }
 0x76d   :  { %v1557_v43 = vmul.f32 %v1552_v41, %v4091_v58 }
 0x76f   :  { %v4138_v44 = vadd.f32 %v1558_v42, %v1557_v43 }
 0x770   :  { %v1392_v46 = vpop.permute.xlu1 %1391 }
 0x771   :  { %3690 = vtanh.f32 %v4138_v44 }
 0x773   :  { %v3689_v45 = vpop.eup %3688 }
 0x774   :  { %v1397_v47 = vmul.f32 %v3689_v45, %v1392_v46 }
 0x776   :  { %3260 = vmatmul.mubr.msk.f32.vlgmr.msra.gmra.mrb[18].mxu0 %vm80_vm1, %v1397_v47 }
 0x777   :  { %3538 = vmatpush3.bf16.msra.mxu0 %v3841_v4  ;;  %3281 = vmatprep.mubr.msk.f32.mxu0 %vm3755_vm0, %v3756_v8 }
 0x778   :  { %3539 = vmatprep.subr.bf16.mxu0 %v3754_v0 }
 0x77b   :  { %v3691_v48 = vpop.eup %3690  ;;  %3541 = vmatpush3.bf16.msra.mxu0 %v3865_v12 }
 0x77c   :  { %v1561_v50 = vmul.f32 %v3691_v48, %v1556_v49  ;;  %3548 = vmatprep.subr.bf16.mxu0 %v3754_v0 }
 0x77e   :  { %3271 = vmatmul.mubr.msk.f32.vlgmr.msra.gmra.mrb[18].mxu1 %vm80_vm1, %v1561_v50  ;;  %3282 = vmatmul.mubr.msk.f32.vlgmr.msra.gmra.mrb[20].mxu0 %vm80_vm1, %v1561_v50 }
 0x77f   :  { %3544 = vmatpush3.bf16.msra.mxu1 %v3856_v9  ;;  %3292 = vmatprep.mubr.msk.f32.mxu1 %vm3755_vm0, %v3756_v8 }
 0x780   :  { %3545 = vmatprep.subr.bf16.mxu1 %v3754_v0  ;;  %3550 = vmatpush3.bf16.msra.mxu0 %v3900_v28 }
 0x781   :  { %3551 = vmatprep.subr.bf16.mxu0 %v3754_v0  ;;  %3303 = vmatprep.mubr.msk.f32.mxu0 %vm3755_vm0, %v3756_v8 }
 0x783   :  { %3547 = vmatpush3.bf16.msra.mxu1 %v3869_v13 }
 0x784   :  { %3553 = vmatpush3.bf16.msra.mxu0 %v3910_v31  ;;  %3554 = vmatprep.subr.bf16.mxu1 %v3754_v0 }
 0x785   :  { %3560 = vmatprep.subr.bf16.mxu0 %v3754_v0 }
 0x786   :  { %3293 = vmatmul.mubr.msk.f32.vlgmr.msra.gmra.mrb[20].mxu1 %vm80_vm1, %v2862_v51 }
 0x787   :  { %3556 = vmatpush3.bf16.msra.mxu1 %v3922_v35  ;;  %3314 = vmatprep.mubr.msk.f32.mxu1 %vm3755_vm0, %v3756_v8 }
 0x788   :  { %3557 = vmatprep.subr.bf16.mxu1 %v3754_v0 }
 0x78b   :  { %3559 = vmatpush3.bf16.msra.mxu1 %v3932_v39 }
 0x78c   :  { %3566 = vmatprep.subr.bf16.mxu1 %v3754_v0 }
 0x849   :  { %v1631_v52 = vpop.f32.mrb[18].mxu0 }
 0x84a   :  { %v3261_v54 = vpop.f32.mrb[19].mxu0 }
 0x851   :  { %v1704_v55 = vpop.f32.mrb[18].mxu1  ;;  %v1795_v56 = vpop.f32.mrb[20].mxu0 }
 0x852   :  { %v1705_v57 = vadd.f32 %v1704_v55, %v1631_v52  ;;  %v3272_v58 = vpop.f32.mrb[19].mxu1  ;;  %v3283_v59 = vpop.f32.mrb[21].mxu0 }
 0x854   :  { %v1708_v60 = vadd.f32 %v3980_v53, %v1705_v57 }
 0x856   :  { %v2861_v61 = vmul.f32 -1.442695, %v1708_v60  ;;  %3692 = vtanh.f32 %v1708_v60 }
 0x858   :  { %3694 = vpow2.f32 %v2861_v61 }
 0x859   :  { %v1868_v62 = vpop.f32.mrb[20].mxu1 }
 0x85a   :  { %v1869_v63 = vadd.f32 %v1868_v62, %v1795_v56  ;;  %v3294_v1 = vpop.f32.mrb[21].mxu1 }
 0x85c   :  { %v1872_v2 = vadd.f32 %v3891_v17, %v1869_v63 }
 0x85e   :  { %v2865_v3 = vmul.f32 -1.442695, %v1872_v2  ;;  %3696 = vtanh.f32 %v1872_v2 }
 0x860   :  { %v3693_v5 = vpop.eup %3692  ;;  %3698 = vpow2.f32 %v2865_v3 }
 0x861   :  { %1718 = vrot.lane.b32.xlu0 %v3693_v5, %s3759_s1 }
 0x862   :  { %v3695_v6 = vpop.eup %3694 }
 0x863   :  { %v1712_v7 = vadd.f32 1.0, %v3695_v6 }
 0x865   :  { %3700 = vrcp.f32 %v1712_v7 }
 0x868   :  { %v3697_v10 = vpop.eup %3696 }
 0x869   :  { %1882 = vrot.lane.b32.xlu0 %v3697_v10, %s3759_s1 }
 0x86a   :  { %v3699_v11 = vpop.eup %3698 }
 0x86b   :  { %v1876_v14 = vadd.f32 1.0, %v3699_v11 }
 0x86d   :  { %3702 = vrcp.f32 %v1876_v14 }
 0x86f   :  { %v3701_v15 = vpop.eup %3700 }
 0x870   :  { %1716 = vrot.lane.b32.xlu1 %v3701_v15, %s3758_s27 }
 0x877   :  { %v3703_v16 = vpop.eup %3702 }
 0x878   :  { %1884 = vrot.lane.b32.xlu0 %v3703_v16, %s3757_s26  ;;  %1880 = vrot.lane.b32.xlu1 %v3703_v16, %s3758_s27 }
 0x87c   :  { %1720 = vrot.lane.b32.xlu1 %v3701_v15, %s3757_s26 }
 0x8d3   :  { %v1719_v18 = vpop.permute.xlu0 %1718 }
 0x8d4   :  { %v1723_v20 = vmul.f32 %v3701_v15, %v1719_v18 }
 0x8db   :  { %v1883_v23 = vpop.permute.xlu0 %1882 }
 0x8dc   :  { %v1887_v25 = vmul.f32 %v3703_v16, %v1883_v23 }
 0x8e2   :  { %v1717_v19 = vpop.permute.xlu1 %1716 }
 0x8e3   :  { %v1722_v21 = vmul.f32 %v1717_v19, %v4134_v38 }
 0x8e5   :  { %v4181_v22 = vadd.f32 %v1723_v20, %v1722_v21 }
 0x8e7   :  { %3704 = vtanh.f32 %v4181_v22 }
 0x8ea   :  { %v1881_v24 = vpop.permute.xlu1 %1880  ;;  %v1885_v34 = vpop.permute.xlu0 %1884 }
 0x8eb   :  { %v1886_v26 = vmul.f32 %v1881_v24, %v4138_v44 }
 0x8ed   :  { %v4185_v27 = vadd.f32 %v1887_v25, %v1886_v26  ;;  %v3752_v26 = vld [vmem:[%s4327_s5] ss:$0 sm:$0xff] }
 0x8ee   :  { %v1721_v30 = vpop.permute.xlu1 %1720 }
 0x8ef   :  { %3706 = vtanh.f32 %v4185_v27 }
 0x8f1   :  { %v3705_v29 = vpop.eup %3704 }
 0x8f2   :  { %v1726_v32 = vmul.f32 %v3705_v29, %v1721_v30 }
 0x8f4   :  { %3304 = vmatmul.mubr.msk.f32.vlgmr.msra.gmra.mrb[22].mxu0 %vm80_vm1, %v1726_v32 }
 0x8f5   :  { %3562 = vmatpush3.bf16.msra.mxu0 %v3841_v4  ;;  %3325 = vmatprep.mubr.msk.f32.mxu0 %vm3755_vm0, %v3756_v8 }
 0x8f6   :  { %3563 = vmatprep.subr.bf16.mxu0 %v3754_v0 }
 0x8f9   :  { %v3707_v33 = vpop.eup %3706  ;;  %3565 = vmatpush3.bf16.msra.mxu0 %v3865_v12 }
 0x8fa   :  { %v1890_v36 = vmul.f32 %v3707_v33, %v1885_v34  ;;  %3572 = vmatprep.subr.bf16.mxu0 %v3754_v0 }
 0x8fc   :  { %3315 = vmatmul.mubr.msk.f32.vlgmr.msra.gmra.mrb[22].mxu1 %vm80_vm1, %v1890_v36  ;;  %3326 = vmatmul.mubr.msk.f32.vlgmr.msra.gmra.mrb[24].mxu0 %vm80_vm1, %v1890_v36 }
 0x8fd   :  { %3568 = vmatpush3.bf16.msra.mxu1 %v3856_v9  ;;  %3336 = vmatprep.mubr.msk.f32.mxu1 %vm3755_vm0, %v3756_v8 }
 0x8fe   :  { %3569 = vmatprep.subr.bf16.mxu1 %v3754_v0  ;;  %3574 = vmatpush3.bf16.msra.mxu0 %v3900_v28 }
 0x8ff   :  { %3575 = vmatprep.subr.bf16.mxu0 %v3754_v0  ;;  %3347 = vmatprep.mubr.msk.f32.mxu0 %vm3755_vm0, %v3756_v8 }
 0x901   :  { %3571 = vmatpush3.bf16.msra.mxu1 %v3869_v13 }
 0x902   :  { %3577 = vmatpush3.bf16.msra.mxu0 %v3910_v31  ;;  %3578 = vmatprep.subr.bf16.mxu1 %v3754_v0 }
 0x903   :  { %3584 = vmatprep.subr.bf16.mxu0 %v3754_v0 }
 0x904   :  { %3337 = vmatmul.mubr.msk.f32.vlgmr.msra.gmra.mrb[24].mxu1 %vm80_vm1, %v2869_v37 }
 0x905   :  { %3580 = vmatpush3.bf16.msra.mxu1 %v3922_v35  ;;  %3358 = vmatprep.mubr.msk.f32.mxu1 %vm3755_vm0, %v3756_v8 }
 0x906   :  { %3581 = vmatprep.subr.bf16.mxu1 %v3754_v0 }
 0x909   :  { %3583 = vmatpush3.bf16.msra.mxu1 %v3932_v39 }
 0x90a   :  { %3590 = vmatprep.subr.bf16.mxu1 %v3754_v0 }
 0x9c7   :  { %v1960_v38 = vpop.f32.mrb[22].mxu0 }
 0x9c8   :  { %v3305_v40 = vpop.f32.mrb[23].mxu0 }
 0x9cf   :  { %v2033_v41 = vpop.f32.mrb[22].mxu1  ;;  %v2124_v42 = vpop.f32.mrb[24].mxu0 }
 0x9d0   :  { %v2034_v43 = vadd.f32 %v2033_v41, %v1960_v38  ;;  %v3316_v44 = vpop.f32.mrb[23].mxu1  ;;  %v3327_v45 = vpop.f32.mrb[25].mxu0 }
 0x9d2   :  { %v2037_v46 = vadd.f32 %v3980_v53, %v2034_v43 }
 0x9d4   :  { %v2868_v47 = vmul.f32 -1.442695, %v2037_v46  ;;  %3708 = vtanh.f32 %v2037_v46 }
 0x9d6   :  { %3710 = vpow2.f32 %v2868_v47 }
 0x9d7   :  { %v2197_v48 = vpop.f32.mrb[24].mxu1 }
 0x9d8   :  { %v2198_v49 = vadd.f32 %v2197_v48, %v2124_v42  ;;  %v3338_v50 = vpop.f32.mrb[25].mxu1 }
 0x9da   :  { %v2201_v51 = vadd.f32 %v3891_v17, %v2198_v49 }
 0x9dc   :  { %v2872_v52 = vmul.f32 -1.442695, %v2201_v51  ;;  %3712 = vtanh.f32 %v2201_v51 }
 0x9de   :  { %v3709_v54 = vpop.eup %3708  ;;  %3714 = vpow2.f32 %v2872_v52 }
 0x9df   :  { %2047 = vrot.lane.b32.xlu0 %v3709_v54, %s3759_s1 }
 0x9e0   :  { %v3711_v55 = vpop.eup %3710 }
 0x9e1   :  { %v2041_v56 = vadd.f32 1.0, %v3711_v55 }
 0x9e3   :  { %3716 = vrcp.f32 %v2041_v56 }
 0x9e6   :  { %v3713_v57 = vpop.eup %3712 }
 0x9e7   :  { %2211 = vrot.lane.b32.xlu0 %v3713_v57, %s3759_s1 }
 0x9e8   :  { %v3715_v58 = vpop.eup %3714 }
 0x9e9   :  { %v2205_v59 = vadd.f32 1.0, %v3715_v58 }
 0x9eb   :  { %3718 = vrcp.f32 %v2205_v59 }
 0x9ed   :  { %v3717_v60 = vpop.eup %3716 }
 0x9ee   :  { %2045 = vrot.lane.b32.xlu1 %v3717_v60, %s3758_s27 }
 0x9f5   :  { %v3719_v61 = vpop.eup %3718 }
 0x9f6   :  { %2213 = vrot.lane.b32.xlu0 %v3719_v61, %s3757_s26  ;;  %2209 = vrot.lane.b32.xlu1 %v3719_v61, %s3758_s27 }
 0x9fa   :  { %2049 = vrot.lane.b32.xlu1 %v3717_v60, %s3757_s26 }
 0xa51   :  { %v2048_v17 = vpop.permute.xlu0 %2047 }
 0xa52   :  { %v2052_v63 = vmul.f32 %v3717_v60, %v2048_v17 }
 0xa59   :  { %v2212_v3 = vpop.permute.xlu0 %2211 }
 0xa5a   :  { %v2216_v6 = vmul.f32 %v3719_v61, %v2212_v3  ;;  %v3753_v61 = vld [vmem:[%s4331_s8] ss:$0 sm:$0xff]  ;;  %v2721_v3 = vld [vmem:[%s4334_s9 + $0x8] sm:$0xff] }
 0xa60   :  { %v2046_v62 = vpop.permute.xlu1 %2045 }
 0xa61   :  { %v2051_v1 = vmul.f32 %v2046_v62, %v4181_v22 }
 0xa63   :  { %v4228_v2 = vadd.f32 %v2052_v63, %v2051_v1 }
 0xa65   :  { %3720 = vtanh.f32 %v4228_v2 }
 0xa68   :  { %v2210_v5 = vpop.permute.xlu1 %2209  ;;  %v2214_v18 = vpop.permute.xlu0 %2213 }
 0xa69   :  { %v2215_v7 = vmul.f32 %v2210_v5, %v4185_v27 }
 0xa6b   :  { %v4232_v10 = vadd.f32 %v2216_v6, %v2215_v7  ;;  %v2722_v6 = vld [vmem:[%s4334_s9 + $0x10] sm:$0xff]  ;;  %v2723_v7 = vld [vmem:[%s4334_s9 + $0x18] sm:$0xff] }
 0xa6c   :  { %v2050_v14 = vpop.permute.xlu1 %2049 }
 0xa6d   :  { %3722 = vtanh.f32 %v4232_v10 }
 0xa6f   :  { %v3721_v11 = vpop.eup %3720 }
 0xa70   :  { %v2055_v15 = vmul.f32 %v3721_v11, %v2050_v14  ;;  %v3612_v11 = vpack.c.bf16 %v2723_v7, %v2722_v6  ;;  %v19_v14 = vstv %s4335_s10 }
 0xa71   :  { %20 = vst [vmem:[#allocation2] sm:$0x1] %v19_v14 }
 0xa72   :  { %3348 = vmatmul.mubr.msk.f32.vlgmr.msra.gmra.mrb[26].mxu0 %vm80_vm1, %v2055_v15 }
 0xa73   :  { %3586 = vmatpush3.bf16.msra.mxu0 %v3841_v4  ;;  %3369 = vmatprep.mubr.msk.f32.mxu0 %vm3755_vm0, %v3756_v8  ;;  %v2876_v4 = vld [vmem:[%s4326_s0 + $0x38] sm:$0xff] }
 0xa74   :  { %3587 = vmatprep.subr.bf16.mxu0 %v3754_v0 }
 0xa77   :  { %v3723_v16 = vpop.eup %3722  ;;  %3589 = vmatpush3.bf16.msra.mxu0 %v3865_v12 }
 0xa78   :  { %v2219_v19 = vmul.f32 %v3723_v16, %v2214_v18  ;;  %3596 = vmatprep.subr.bf16.mxu0 %v3754_v0 }
 0xa7a   :  { %3359 = vmatmul.mubr.msk.f32.vlgmr.msra.gmra.mrb[26].mxu1 %vm80_vm1, %v2219_v19  ;;  %3370 = vmatmul.mubr.msk.f32.vlgmr.msra.gmra.mrb[28].mxu0 %vm80_vm1, %v2219_v19 }
 0xa7b   :  { %3592 = vmatpush3.bf16.msra.mxu1 %v3856_v9  ;;  %3380 = vmatprep.mubr.msk.f32.mxu1 %vm3755_vm0, %v3756_v8 }
 0xa7c   :  { %3593 = vmatprep.subr.bf16.mxu1 %v3754_v0  ;;  %3598 = vmatpush3.bf16.msra.mxu0 %v3900_v28 }
 0xa7d   :  { %3599 = vmatprep.subr.bf16.mxu0 %v3754_v0  ;;  %3391 = vmatprep.mubr.msk.f32.mxu0 %vm3755_vm0, %v3756_v8 }
 0xa7f   :  { %3595 = vmatpush3.bf16.msra.mxu1 %v3869_v13 }
 0xa80   :  { %3601 = vmatpush3.bf16.msra.mxu0 %v3910_v31  ;;  %3602 = vmatprep.subr.bf16.mxu1 %v3754_v0 }
 0xa81   :  { %3608 = vmatprep.subr.bf16.mxu0 %v3754_v0 }
 0xa82   :  { %3381 = vmatmul.mubr.msk.f32.vlgmr.msra.gmra.mrb[28].mxu1 %vm80_vm1, %v2876_v4 }
 0xa83   :  { %3604 = vmatpush3.bf16.msra.mxu1 %v3922_v35  ;;  %3402 = vmatprep.mubr.msk.f32.mxu1 %vm3755_vm0, %v3756_v8 }
 0xa84   :  { %3605 = vmatprep.subr.bf16.mxu1 %v3754_v0 }
 0xa87   :  { %3607 = vmatpush3.bf16.msra.mxu1 %v3932_v39 }
 0xb45   :  { %v2289_v9 = vpop.f32.mrb[26].mxu0 }
 0xb46   :  { %v3349_v12 = vpop.f32.mrb[27].mxu0 }
 0xb4d   :  { %v2362_v13 = vpop.f32.mrb[26].mxu1  ;;  %v2453_v28 = vpop.f32.mrb[28].mxu0 }
 0xb4e   :  { %v2363_v31 = vadd.f32 %v2362_v13, %v2289_v9  ;;  %v3360_v20 = vpop.f32.mrb[27].mxu1  ;;  %v3371_v21 = vpop.f32.mrb[29].mxu0  ;;  %v2885_v13 = vld [vmem:[#allocation2] ss:$0 sm:$0xff] }
 0xb50   :  { %v2366_v22 = vadd.f32 %v3980_v53, %v2363_v31 }
 0xb52   :  { %v2875_v23 = vmul.f32 -1.442695, %v2366_v22  ;;  %3724 = vtanh.f32 %v2366_v22 }
 0xb54   :  { %3726 = vpow2.f32 %v2875_v23 }
 0xb55   :  { %v2526_v35 = vpop.f32.mrb[28].mxu1 }
 0xb56   :  { %v2527_v24 = vadd.f32 %v2526_v35, %v2453_v28  ;;  %v3382_v25 = vpop.f32.mrb[29].mxu1 }
 0xb58   :  { %v2530_v39 = vadd.f32 %v3752_v26, %v2527_v24 }
 0xb5a   :  { %v2879_v27 = vmul.f32 -1.442695, %v2530_v39  ;;  %3728 = vtanh.f32 %v2530_v39 }
 0xb5c   :  { %v3725_v29 = vpop.eup %3724  ;;  %3730 = vpow2.f32 %v2879_v27 }
 0xb5d   :  { %2376 = vrot.lane.b32.xlu0 %v3725_v29, %s3759_s1 }
 0xb5e   :  { %v3727_v30 = vpop.eup %3726 }
 0xb5f   :  { %v2370_v32 = vadd.f32 1.0, %v3727_v30 }
 0xb61   :  { %3732 = vrcp.f32 %v2370_v32 }
 0xb64   :  { %v3729_v53 = vpop.eup %3728 }
 0xb65   :  { %2540 = vrot.lane.b32.xlu0 %v3729_v53, %s3759_s1 }
 0xb66   :  { %v3731_v33 = vpop.eup %3730 }
 0xb67   :  { %v2534_v34 = vadd.f32 1.0, %v3731_v33 }
 0xb69   :  { %3734 = vrcp.f32 %v2534_v34 }
 0xb6b   :  { %v3733_v36 = vpop.eup %3732 }
 0xb6c   :  { %2374 = vrot.lane.b32.xlu1 %v3733_v36, %s3758_s27 }
 0xb73   :  { %v3735_v37 = vpop.eup %3734 }
 0xb74   :  { %2542 = vrot.lane.b32.xlu0 %v3735_v37, %s3757_s26  ;;  %2538 = vrot.lane.b32.xlu1 %v3735_v37, %s3758_s27 }
 0xb78   :  { %2378 = vrot.lane.b32.xlu1 %v3733_v36, %s3757_s26 }
 0xbcf   :  { %v2377_v38 = vpop.permute.xlu0 %2376 }
 0xbd0   :  { %v2381_v41 = vmul.f32 %v3733_v36, %v2377_v38 }
 0xbd7   :  { %v2541_v44 = vpop.permute.xlu0 %2540 }
 0xbd8   :  { %v2545_v46 = vmul.f32 %v3735_v37, %v2541_v44 }
 0xbde   :  { %v2375_v40 = vpop.permute.xlu1 %2374 }
 0xbdf   :  { %v2380_v42 = vmul.f32 %v2375_v40, %v4228_v2  ;;  %v2720_v2 = vld [vmem:[%s4334_s9] sm:$0xff] }
 0xbe0   :  { %v3609_v5 = vpack.c.bf16 %v2721_v3, %v2720_v2 }
 0xbe1   :  { %v2382_v43 = vadd.f32 %v2381_v41, %v2380_v42 }
 0xbe3   :  { %3736 = vtanh.f32 %v2382_v43 }
 0xbe6   :  { %v2539_v45 = vpop.permute.xlu1 %2538  ;;  %v2543_v54 = vpop.permute.xlu0 %2542 }
 0xbe7   :  { %v2544_v47 = vmul.f32 %v2539_v45, %v4232_v10 }
 0xbe9   :  { %v2546_v48 = vadd.f32 %v2545_v46, %v2544_v47 }
 0xbea   :  { %v2379_v50 = vpop.permute.xlu1 %2378 }
 0xbeb   :  { %3738 = vtanh.f32 %v2546_v48  ;;  %2717 = vst.msk [vmem:[%s4332_s13] sm:$0xff] %vm80_vm1, %v2546_v48 }
 0xbed   :  { %v3737_v49 = vpop.eup %3736 }
 0xbee   :  { %v2384_v51 = vmul.f32 %v3737_v49, %v2379_v50 }
 0xbf0   :  { %3392 = vmatmul.mubr.msk.f32.vlgmr.msra.gmra.mrb[30].mxu0 %vm80_vm1, %v2384_v51 }
 0xbf1   :  { %3413 = vmatprep.mubr.msk.f32.mxu0 %vm3755_vm0, %v3756_v8  ;;  %3610 = vmatpush3.bf16.msra.mxu0 %v3609_v5 }
 0xbf2   :  { %3611 = vmatprep.subr.bf16.mxu0 %v3754_v0 }
 0xbf5   :  { %v3739_v52 = vpop.eup %3738  ;;  %3613 = vmatpush3.bf16.msra.mxu0 %v3612_v11 }
 0xbf6   :  { %v2548_v55 = vmul.f32 %v3739_v52, %v2543_v54 }
 0xbf8   :  { %3403 = vmatmul.mubr.msk.f32.vlgmr.msra.gmra.mrb[30].mxu1 %vm80_vm1, %v2548_v55  ;;  %2714 = vst.msk [vmem:[%s4333_s12] sm:$0xff] %vm80_vm1, %v2548_v55 }
 0xcc3   :  { %v2618_v56 = vpop.f32.mrb[30].mxu0 }
 0xcc4   :  { %v3393_v57 = vpop.f32.mrb[31].mxu0 }
 0xccb   :  { %v2691_v58 = vpop.f32.mrb[30].mxu1 }
 0xccc   :  { %v2692_v59 = vadd.f32 %v2691_v58, %v2618_v56  ;;  %v3404_v60 = vpop.f32.mrb[31].mxu1 }
 0xcce   :  { %v2695_v8 = vadd.f32 %v3753_v61, %v2692_v59 }
 0xcd0   :  { %v2882_v17 = vmul.f32 -1.442695, %v2695_v8  ;;  %3740 = vtanh.f32 %v2695_v8 }
 0xcd2   :  { %3742 = vpow2.f32 %v2882_v17 }
 0xcda   :  { %v3741_v62 = vpop.eup %3740 }
 0xcdb   :  { %2705 = vrot.lane.b32.xlu0 %v3741_v62, %s3759_s1 }
 0xcdc   :  { %v3743_v63 = vpop.eup %3742 }
 0xcdd   :  { %v2699_v1 = vadd.f32 1.0, %v3743_v63 }
 0xcdf   :  { %3744 = vrcp.f32 %v2699_v1 }
 0xce9   :  { %v3745_v10 = vpop.eup %3744 }
 0xcea   :  { %2703 = vrot.lane.b32.xlu1 %v3745_v10, %s3758_s27 }
 0xcee   :  { %2707 = vrot.lane.b32.xlu1 %v3745_v10, %s3757_s26 }
 0xd4d   :  { %v2706_v0 = vpop.permute.xlu0 %2705 }
 0xd4e   :  { %v2710_v16 = vmul.f32 %v3745_v10, %v2706_v0 }
 0xd5c   :  { %v2704_v15 = vpop.permute.xlu1 %2703 }
 0xd5d   :  { %v2709_v18 = vmul.f32 %v2704_v15, %v2382_v43 }
 0xd5f   :  { %v2711_v19 = vadd.f32 %v2710_v16, %v2709_v18 }
 0xd60   :  { %v2708_v9 = vpop.permute.xlu1 %2707 }
 0xd61   :  { %3746 = vtanh.f32 %v2711_v19  ;;  %2884 = vst.msk [vmem:[%s4332_s13 + $0x8] sm:$0xff] %vm80_vm1, %v2711_v19 }
 0xd6b   :  { %v3747_v4 = vpop.eup %3746 }
 0xd6c   :  { %v2713_v12 = vmul.f32 %v3747_v4, %v2708_v9 }
 0xd6e   :  { %2883 = vst.msk [vmem:[%s4333_s12 + $0x8] sm:$0xff] %vm80_vm1, %v2713_v12  ;;  %3414 = vmatmul.mubr.msk.f32.vlgmr.msra.gmra.mrb[32].mxu0 %vm80_vm1, %v2713_v12 }
 0xe41   :  { %v2800_v28 = vpop.f32.mrb[32].mxu0 }
 0xe42   :  { %v2801_v31 = vadd.f32 %v2885_v13, %v2800_v28  ;;  %v3415_v20 = vpop.f32.mrb[33].mxu0 }
 0xe44   :  { %v2887_v21 = vmul.f32 -1.442695, %v2801_v31 }
 0xe46   :  { %3748 = vpow2.f32 %v2887_v21 }
 0xe50   :  { %v3749_v22 = vpop.eup %3748 }
 0xe51   :  { %v2807_v23 = vadd.f32 1.0, %v3749_v22 }
 0xe53   :  { %3750 = vrcp.f32 %v2807_v23 }
 0xe5d   :  { %v3751_v35 = vpop.eup %3750 }
 0xe5e   :  { %2811 = vst.msk [vmem:[%s4336_s11] sm:$0xff] %vm2810_vm2, %v3751_v35 }

</bundles_post_ra>
